<compile_context>
chip_gen: v5e
topology: v5e:2x2
jax: 0.10.0
libtpu: 0.0.40
codegen_flags: <defaults>
</compile_context>

<pallas_src>
import functools
import math

import jax
import jax.numpy as jnp
from jax import lax
from jax.experimental import pallas as pl
from jax.experimental.pallas import tpu as pltpu

_LANE = 128


def _round_up(x, m=_LANE):
    return ((x + m - 1) // m) * m


# ----------------------------------------------------------------------------
# In-kernel helpers
# ----------------------------------------------------------------------------
def _mm_nt(a, b, mm_dtype=None):
    """a @ b.T via dot_general contracting the last dims (feeds the MXU directly)."""
    if mm_dtype is not None:
        a = a.astype(mm_dtype)
        b = b.astype(mm_dtype)
    return lax.dot_general(a, b, (((1,), (1,)), ((), ())),
                           preferred_element_type=jnp.float32)


def _mm_nn(a, b, mm_dtype=None):
    if mm_dtype is not None:
        a = a.astype(mm_dtype)
        b = b.astype(mm_dtype)
    return jnp.dot(a, b, preferred_element_type=jnp.float32)


def _gnn_layer_body(seq, adj, w1_cat, w2_cat, *, n_head, out_f, pad_f, mm_dtype):
    """One GNNLayer forward on VMEM values (active=True path, as the decoder always uses).

    seq:     (N, pad_in)               zero-padded features
    w*_cat:  (n_head * pad_f, pad_in)  per-head weights, each head zero-padded to pad_f
                                       rows so its slice is lane-aligned.
    returns  (N, pad_f) with zero padding columns (exact, since tanh(0) == 0).
    """
    inv_sqrt = 1.0 / math.sqrt(out_f)      # TRUE out_features (PyTorch divides by this)
    inv_head = 1.0 / n_head

    # Batched per-head projections (one lane-dense matmul each).
    fts_all = jnp.tanh(_mm_nt(seq, w1_cat, mm_dtype))                # (N, H*pad_f)
    fts2_all = jnp.tanh(_mm_nt(seq, w2_cat, mm_dtype)) * inv_sqrt    # fold 1/sqrt(out_f) here
    v_all = jnp.tanh(fts_all)                                        # second tanh, one wide pass

    acc = None
    for h in range(n_head):                # static unroll (n_head <= 8)
        lo = h * pad_f                     # lane-aligned (multiple of 128) slice start
        fts = fts_all[:, lo:lo + pad_f]
        fts2 = fts2_all[:, lo:lo + pad_f]
        v = v_all[:, lo:lo + pad_f]

        logits = _mm_nt(fts2, fts, mm_dtype)           # (N, N), already 1/sqrt-scaled
        coefs = jnp.exp(logits) * adj                  # unnormalized masked coefficients
        total = jnp.sum(coefs, keepdims=True)          # (1, 1) global scalar

        hv = _mm_nn(coefs, v, mm_dtype)                # (N, pad_f)
        # Exact normalization + 1/n_head on the small slab (commutes through adj @ ...).
        hv = hv * (inv_head / total)
        acc = hv if acc is None else acc + hv

    return _mm_nn(adj, acc, mm_dtype)                  # single adj @ acc per layer


# ----------------------------------------------------------------------------
# Fused decoder kernel: gnn_4 -> gnn_5 -> gnn_6 -> sigmoid(z_hat z_hat^T)
# ----------------------------------------------------------------------------
def _igae_decoder_kernel(z_ref, adj_ref,
                         w14_ref, w24_ref, w15_ref, w25_ref, w16_ref, w26_ref,
                         z_hat_ref, z_hat_adj_ref,
                         *, heads, out_dims, pad_dims, mm_dtype):
    adj = adj_ref[...]
    z = z_ref[...]

    z = _gnn_layer_body(z, adj, w14_ref[...], w24_ref[...],
                        n_head=heads[0], out_f=out_dims[0], pad_f=pad_dims[0],
                        mm_dtype=mm_dtype)
    z = _gnn_layer_body(z, adj, w15_ref[...], w25_ref[...],
                        n_head=heads[1], out_f=out_dims[1], pad_f=pad_dims[1],
                        mm_dtype=mm_dtype)
    z_hat = _gnn_layer_body(z, adj, w16_ref[...], w26_ref[...],
                            n_head=heads[2], out_f=out_dims[2], pad_f=pad_dims[2],
                            mm_dtype=mm_dtype)

    z_hat_ref[...] = z_hat                                           # lane-dense store
    z_hat_adj_ref[...] = jax.nn.sigmoid(_mm_nt(z_hat, z_hat, mm_dtype))


# ----------------------------------------------------------------------------
# Wrapper
# ----------------------------------------------------------------------------
def igae_decoder(z_igae, adj, params, *, use_bf16_matmul=False):
    """IGAE_decoder.forward(z_igae, adj) -> (z_hat, z_hat_adj)."""
    w14_s, w24_s = params["gnn_4"]   # (h4, d2, d1)
    w15_s, w25_s = params["gnn_5"]   # (h5, d3, d2)
    w16_s, w26_s = params["gnn_6"]   # (h6, n_input, d3)

    n, d1 = z_igae.shape
    h4, d2, _ = w14_s.shape
    h5, d3, _ = w15_s.shape
    h6, n_input, _ = w16_s.shape

    p1, p2, p3, pin = (_round_up(d) for d in (d1, d2, d3, n_input))

    def pad_heads(w, pad_out, pad_in):
        # (h, o, i) -> (h*pad_out, pad_in), zero-padded, lane-aligned per head.
        h, o, i = w.shape
        w = jnp.pad(w, ((0, 0), (0, pad_out - o), (0, pad_in - i)))
        return w.reshape(h * pad_out, pad_in)

    w14 = pad_heads(w14_s, p2, p1)
    w24 = pad_heads(w24_s, p2, p1)
    w15 = pad_heads(w15_s, p3, p2)
    w25 = pad_heads(w25_s, p3, p2)
    w16 = pad_heads(w16_s, pin, p3)
    w26 = pad_heads(w26_s, pin, p3)

    z_pad = jnp.pad(z_igae, ((0, 0), (0, p1 - d1)))

    heads = (h4, h5, h6)
    out_dims = (d2, d3, n_input)     # true out_features -> 1/sqrt scale matches PyTorch
    pad_dims = (p2, p3, pin)
    mm_dtype = jnp.bfloat16 if use_bf16_matmul else None

    kernel = functools.partial(_igae_decoder_kernel, heads=heads, out_dims=out_dims,
                               pad_dims=pad_dims, mm_dtype=mm_dtype)

    full = lambda shape: pl.BlockSpec(shape, lambda: (0,) * len(shape))

    # --- advisory cost estimate ----------------------------------------------
    flops = trans = 0
    fin = p1
    for nh, pf in zip(heads, pad_dims):
        flops += 2 * 2 * n * fin * (nh * pf)        # two batched projections
        flops += nh * 2 * (2 * n * n * pf)          # logits + coefs@v per head
        flops += 2 * n * n * pf                     # adj @ acc (once per layer)
        flops += nh * 3 * n * n                     # exp-mask multiply / sum (elementwise)
        trans += 3 * n * nh * pf + nh * n * n       # tanh x3, exp
        fin = pf
    flops += 2 * n * n * pin                        # z_hat z_hat^T
    trans += n * n                                  # sigmoid
    weight_elems = sum(int(w.size) for w in (w14, w24, w15, w25, w16, w26))
    bytes_accessed = 4 * (n * p1 + n * n + weight_elems + n * pin + n * n)
    cost = pl.CostEstimate(flops=int(flops), transcendentals=int(trans),
                           bytes_accessed=int(bytes_accessed))

    # --- VMEM budget (working set + headroom); gridless call => no pipeline buffers needed
    peak = 0
    fin = p1
    for nh, pf in zip(heads, pad_dims):
        live = 4 * (n * fin            # layer input
                    + 3 * n * nh * pf  # fts_all, fts2_all, v_all
                    + 2 * n * n        # coefs slab + exp temp
                    + 2 * n * pf)      # per-head product + accumulator
        peak = max(peak, live)
        fin = pf
    working_set = 4 * (n * p1 + 2 * n * n + n * pin + weight_elems) + peak
    vmem_limit = int(min(max(2 * working_set, 32 << 20), 100 << 20))

    z_hat_pad, z_hat_adj = pl.pallas_call(
        kernel,
        out_shape=(jax.ShapeDtypeStruct((n, pin), jnp.float32),
                   jax.ShapeDtypeStruct((n, n), jnp.float32)),
        in_specs=[
            full((n, p1)),              # z_igae (lane-padded)
            full((n, n)),               # adj
            full(w14.shape), full(w24.shape),
            full(w15.shape), full(w25.shape),
            full(w16.shape), full(w26.shape),
        ],
        out_specs=(full((n, pin)), full((n, n))),
        compiler_params=pltpu.CompilerParams(vmem_limit_bytes=vmem_limit),
        cost_estimate=cost,
    )(z_pad, adj, w14, w24, w15, w25, w16, w26)

    return z_hat_pad[:, :n_input], z_hat_adj


# ----------------------------------------------------------------------------
# Parameter init (deterministic, xavier_uniform like the PyTorch module)
# ----------------------------------------------------------------------------
def xavier_uniform(key, n_head, out_f, in_f):
    limit = math.sqrt(6.0 / (in_f + out_f))
    return jax.random.uniform(key, (n_head, out_f, in_f), jnp.float32, -limit, limit)


def init_gnn_layer_params(key, in_f, out_f, n_head):
    k1, k2 = jax.random.split(key)
    return (xavier_uniform(k1, n_head, out_f, in_f),
            xavier_uniform(k2, n_head, out_f, in_f))


def init_decoder_params(key, gae_n_dec_1, gae_n_dec_2, gae_n_dec_3, n_head, n_input):
    keys = jax.random.split(key, 3)
    return {
        "gnn_4": init_gnn_layer_params(keys[0], gae_n_dec_1, gae_n_dec_2, n_head[0]),
        "gnn_5": init_gnn_layer_params(keys[1], gae_n_dec_2, gae_n_dec_3, n_head[1]),
        "gnn_6": init_gnn_layer_params(keys[2], gae_n_dec_3, n_input, n_head[2]),
    }


@jax.jit
def igae_decoder_forward(z_igae, adj, params):
    return igae_decoder(z_igae, adj, params)


# ----------------------------------------------------------------------------
# Pure-JAX reference (for numerical parity checking)
# ----------------------------------------------------------------------------
def _ref_attn_head(seq, adj, w1, w2, active=True):
    fts = jnp.tanh(seq @ w1.T)
    fts2 = jnp.tanh(seq @ w2.T)
    logits = (fts2 @ fts.T) / math.sqrt(fts.shape[-1])
    coefs = jnp.exp(logits) * adj
    coefs = coefs / jnp.sum(coefs)
    v = jnp.tanh(fts) if active else fts
    return adj @ (coefs @ v)


def _ref_gnn_layer(seq, adj, w1s, w2s):
    n_head = w1s.shape[0]
    out = sum(_ref_attn_head(seq, adj, w1s[h], w2s[h], True) for h in range(n_head))
    return out / n_head


def _ref_decoder(z, adj, params):
    z = _ref_gnn_layer(z, adj, *params["gnn_4"])
    z = _ref_gnn_layer(z, adj, *params["gnn_5"])
    z_hat = _ref_gnn_layer(z, adj, *params["gnn_6"])
    return z_hat, jax.nn.sigmoid(z_hat @ z_hat.T)


# ----------------------------------------------------------------------------
# main
# ----------------------------------------------------------------------------
if __name__ == "__main__":
    key = jax.random.PRNGKey(0)
    k_z, k_adj, k_params = jax.random.split(key, 3)

    # small, consistent shapes
    N = 16                              # number of graph nodes
    gae_n_dec_1 = 8                     # latent dim of z_igae (decoder input)
    gae_n_dec_2 = 16
    gae_n_dec_3 = 32
    n_input = 16                        # reconstructed feature dim
    n_head = [4, 1, 1]

    # decoder input: latent node embeddings
    z_igae = jax.random.normal(k_z, (N, gae_n_dec_1), dtype=jnp.float32)

    # symmetric, self-looped, row-normalized adjacency (acts as bias_mat)
    a = (jax.random.uniform(k_adj, (N, N)) > 0.6).astype(jnp.float32)
    a = jnp.maximum(a, a.T) + jnp.eye(N, dtype=jnp.float32)
    adj = a / jnp.sum(a, axis=-1, keepdims=True)

    params = init_decoder_params(k_params, gae_n_dec_1, gae_n_dec_2, gae_n_dec_3,
                                 n_head, n_input)

    z_hat, z_hat_adj = igae_decoder_forward(z_igae, adj, params)
    jax.block_until_ready((z_hat, z_hat_adj))

    assert z_hat.shape == (N, n_input)
    assert z_hat_adj.shape == (N, N)
    assert bool(jnp.all(jnp.isfinite(z_hat)))
    assert bool(jnp.all(jnp.isfinite(z_hat_adj)))

    # numerical parity vs pure-JAX reference (exact f32 path, no approx reciprocal)
    ref_z_hat, ref_z_hat_adj = jax.jit(_ref_decoder)(z_igae, adj, params)
    jax.block_until_ready((ref_z_hat, ref_z_hat_adj))
    assert bool(jnp.allclose(z_hat, ref_z_hat, rtol=1e-3, atol=1e-4)), \
        float(jnp.max(jnp.abs(z_hat - ref_z_hat)))
    assert bool(jnp.allclose(z_hat_adj, ref_z_hat_adj, rtol=1e-3, atol=1e-4)), \
        float(jnp.max(jnp.abs(z_hat_adj - ref_z_hat_adj)))

    print("KERNEL_OK")
</pallas_src>

<mosaic_0001>
module attributes {stable_mosaic.version = 11 : i64} {
  func.func @_igae_decoder_kernel(%arg0: memref<16x128xf32, #tpu.memory_space<vmem>>, %arg1: memref<16x16xf32, #tpu.memory_space<vmem>>, %arg2: memref<512x128xf32, #tpu.memory_space<vmem>>, %arg3: memref<512x128xf32, #tpu.memory_space<vmem>>, %arg4: memref<128x128xf32, #tpu.memory_space<vmem>>, %arg5: memref<128x128xf32, #tpu.memory_space<vmem>>, %arg6: memref<128x128xf32, #tpu.memory_space<vmem>>, %arg7: memref<128x128xf32, #tpu.memory_space<vmem>>, %arg8: memref<16x128xf32, #tpu.memory_space<vmem>>, %arg9: memref<16x16xf32, #tpu.memory_space<vmem>>) attributes {dimension_semantics = [], scalar_prefetch = 0 : i64, scratch_operands = 0 : i64, tpu.core_type = #tpu.core_type<tc>} {
    %c0 = arith.constant 0 : index
    %c0_0 = arith.constant 0 : index
    %0 = vector.load %arg1[%c0, %c0_0] : memref<16x16xf32, #tpu.memory_space<vmem>>, vector<16x16xf32>
    %c0_1 = arith.constant 0 : index
    %c0_2 = arith.constant 0 : index
    %1 = vector.load %arg0[%c0_1, %c0_2] : memref<16x128xf32, #tpu.memory_space<vmem>>, vector<16x128xf32>
    %c0_3 = arith.constant 0 : index
    %c0_4 = arith.constant 0 : index
    %2 = vector.load %arg2[%c0_3, %c0_4] : memref<512x128xf32, #tpu.memory_space<vmem>>, vector<512x128xf32>
    %c0_5 = arith.constant 0 : index
    %c0_6 = arith.constant 0 : index
    %3 = vector.load %arg3[%c0_5, %c0_6] : memref<512x128xf32, #tpu.memory_space<vmem>>, vector<512x128xf32>
    %cst = arith.constant dense<0.000000e+00> : vector<16x512xf32>
    %4 = tpu.matmul %1, %2, %cst {dimension_numbers = #tpu.dot_dimension_numbers<[1], [1], [0], [0], [0, 0, 1, 0], [], []>} : vector<16x128xf32>, vector<512x128xf32>, vector<16x512xf32> -> vector<16x512xf32>
    %5 = math.tanh %4 : vector<16x512xf32>
    %cst_7 = arith.constant dense<0.000000e+00> : vector<16x512xf32>
    %6 = tpu.matmul %1, %3, %cst_7 {dimension_numbers = #tpu.dot_dimension_numbers<[1], [1], [0], [0], [0, 0, 1, 0], [], []>} : vector<16x128xf32>, vector<512x128xf32>, vector<16x512xf32> -> vector<16x512xf32>
    %7 = math.tanh %6 : vector<16x512xf32>
    %cst_8 = arith.constant 2.500000e-01 : f32
    %8 = vector.broadcast %cst_8 : f32 to vector<16x512xf32>
    %9 = arith.mulf %7, %8 : vector<16x512xf32>
    %10 = math.tanh %5 : vector<16x512xf32>
    %11 = vector.extract_strided_slice %5 {offsets = [0, 0], sizes = [16, 128], strides = [1, 1]} : vector<16x512xf32> to vector<16x128xf32>
    %12 = vector.extract_strided_slice %9 {offsets = [0, 0], sizes = [16, 128], strides = [1, 1]} : vector<16x512xf32> to vector<16x128xf32>
    %13 = vector.extract_strided_slice %10 {offsets = [0, 0], sizes = [16, 128], strides = [1, 1]} : vector<16x512xf32> to vector<16x128xf32>
    %cst_9 = arith.constant dense<0.000000e+00> : vector<16x16xf32>
    %14 = tpu.matmul %12, %11, %cst_9 {dimension_numbers = #tpu.dot_dimension_numbers<[1], [1], [0], [0], [0, 0, 1, 0], [], []>} : vector<16x128xf32>, vector<16x128xf32>, vector<16x16xf32> -> vector<16x16xf32>
    %15 = math.exp %14 : vector<16x16xf32>
    %16 = arith.mulf %15, %0 : vector<16x16xf32>
    %17 = vector.shape_cast %16 : vector<16x16xf32> to vector<1x16x16xf32>
    %cst_10 = arith.constant dense<0.000000e+00> : vector<1xf32>
    %18 = vector.multi_reduction <add>, %17, %cst_10 [1, 2] : vector<1x16x16xf32> to vector<1xf32>
    %19 = vector.shape_cast %18 : vector<1xf32> to vector<1x1x1xf32>
    %20 = vector.extract %19[0, 0, 0] : f32 from vector<1x1x1xf32>
    %21 = vector.broadcast %20 : f32 to vector<1x1xf32>
    %cst_11 = arith.constant dense<0.000000e+00> : vector<16x128xf32>
    %22 = tpu.matmul %16, %13, %cst_11 {dimension_numbers = #tpu.dot_dimension_numbers<[1], [0], [0], [1], [0, 0, 1, 1], [], []>} : vector<16x16xf32>, vector<16x128xf32>, vector<16x128xf32> -> vector<16x128xf32>
    %cst_12 = arith.constant 2.500000e-01 : f32
    %23 = vector.broadcast %cst_12 : f32 to vector<1x1xf32>
    %24 = arith.divf %23, %21 : vector<1x1xf32>
    %25 = vector.broadcast %24 : vector<1x1xf32> to vector<16x128xf32>
    %26 = arith.mulf %22, %25 : vector<16x128xf32>
    %27 = vector.extract_strided_slice %5 {offsets = [0, 128], sizes = [16, 128], strides = [1, 1]} : vector<16x512xf32> to vector<16x128xf32>
    %28 = vector.extract_strided_slice %9 {offsets = [0, 128], sizes = [16, 128], strides = [1, 1]} : vector<16x512xf32> to vector<16x128xf32>
    %29 = vector.extract_strided_slice %10 {offsets = [0, 128], sizes = [16, 128], strides = [1, 1]} : vector<16x512xf32> to vector<16x128xf32>
    %cst_13 = arith.constant dense<0.000000e+00> : vector<16x16xf32>
    %30 = tpu.matmul %28, %27, %cst_13 {dimension_numbers = #tpu.dot_dimension_numbers<[1], [1], [0], [0], [0, 0, 1, 0], [], []>} : vector<16x128xf32>, vector<16x128xf32>, vector<16x16xf32> -> vector<16x16xf32>
    %31 = math.exp %30 : vector<16x16xf32>
    %32 = arith.mulf %31, %0 : vector<16x16xf32>
    %33 = vector.shape_cast %32 : vector<16x16xf32> to vector<1x16x16xf32>
    %cst_14 = arith.constant dense<0.000000e+00> : vector<1xf32>
    %34 = vector.multi_reduction <add>, %33, %cst_14 [1, 2] : vector<1x16x16xf32> to vector<1xf32>
    %35 = vector.shape_cast %34 : vector<1xf32> to vector<1x1x1xf32>
    %36 = vector.extract %35[0, 0, 0] : f32 from vector<1x1x1xf32>
    %37 = vector.broadcast %36 : f32 to vector<1x1xf32>
    %cst_15 = arith.constant dense<0.000000e+00> : vector<16x128xf32>
    %38 = tpu.matmul %32, %29, %cst_15 {dimension_numbers = #tpu.dot_dimension_numbers<[1], [0], [0], [1], [0, 0, 1, 1], [], []>} : vector<16x16xf32>, vector<16x128xf32>, vector<16x128xf32> -> vector<16x128xf32>
    %cst_16 = arith.constant 2.500000e-01 : f32
    %39 = vector.broadcast %cst_16 : f32 to vector<1x1xf32>
    %40 = arith.divf %39, %37 : vector<1x1xf32>
    %41 = vector.broadcast %40 : vector<1x1xf32> to vector<16x128xf32>
    %42 = arith.mulf %38, %41 : vector<16x128xf32>
    %43 = arith.addf %26, %42 : vector<16x128xf32>
    %44 = vector.extract_strided_slice %5 {offsets = [0, 256], sizes = [16, 128], strides = [1, 1]} : vector<16x512xf32> to vector<16x128xf32>
    %45 = vector.extract_strided_slice %9 {offsets = [0, 256], sizes = [16, 128], strides = [1, 1]} : vector<16x512xf32> to vector<16x128xf32>
    %46 = vector.extract_strided_slice %10 {offsets = [0, 256], sizes = [16, 128], strides = [1, 1]} : vector<16x512xf32> to vector<16x128xf32>
    %cst_17 = arith.constant dense<0.000000e+00> : vector<16x16xf32>
    %47 = tpu.matmul %45, %44, %cst_17 {dimension_numbers = #tpu.dot_dimension_numbers<[1], [1], [0], [0], [0, 0, 1, 0], [], []>} : vector<16x128xf32>, vector<16x128xf32>, vector<16x16xf32> -> vector<16x16xf32>
    %48 = math.exp %47 : vector<16x16xf32>
    %49 = arith.mulf %48, %0 : vector<16x16xf32>
    %50 = vector.shape_cast %49 : vector<16x16xf32> to vector<1x16x16xf32>
    %cst_18 = arith.constant dense<0.000000e+00> : vector<1xf32>
    %51 = vector.multi_reduction <add>, %50, %cst_18 [1, 2] : vector<1x16x16xf32> to vector<1xf32>
    %52 = vector.shape_cast %51 : vector<1xf32> to vector<1x1x1xf32>
    %53 = vector.extract %52[0, 0, 0] : f32 from vector<1x1x1xf32>
    %54 = vector.broadcast %53 : f32 to vector<1x1xf32>
    %cst_19 = arith.constant dense<0.000000e+00> : vector<16x128xf32>
    %55 = tpu.matmul %49, %46, %cst_19 {dimension_numbers = #tpu.dot_dimension_numbers<[1], [0], [0], [1], [0, 0, 1, 1], [], []>} : vector<16x16xf32>, vector<16x128xf32>, vector<16x128xf32> -> vector<16x128xf32>
    %cst_20 = arith.constant 2.500000e-01 : f32
    %56 = vector.broadcast %cst_20 : f32 to vector<1x1xf32>
    %57 = arith.divf %56, %54 : vector<1x1xf32>
    %58 = vector.broadcast %57 : vector<1x1xf32> to vector<16x128xf32>
    %59 = arith.mulf %55, %58 : vector<16x128xf32>
    %60 = arith.addf %43, %59 : vector<16x128xf32>
    %61 = vector.extract_strided_slice %5 {offsets = [0, 384], sizes = [16, 128], strides = [1, 1]} : vector<16x512xf32> to vector<16x128xf32>
    %62 = vector.extract_strided_slice %9 {offsets = [0, 384], sizes = [16, 128], strides = [1, 1]} : vector<16x512xf32> to vector<16x128xf32>
    %63 = vector.extract_strided_slice %10 {offsets = [0, 384], sizes = [16, 128], strides = [1, 1]} : vector<16x512xf32> to vector<16x128xf32>
    %cst_21 = arith.constant dense<0.000000e+00> : vector<16x16xf32>
    %64 = tpu.matmul %62, %61, %cst_21 {dimension_numbers = #tpu.dot_dimension_numbers<[1], [1], [0], [0], [0, 0, 1, 0], [], []>} : vector<16x128xf32>, vector<16x128xf32>, vector<16x16xf32> -> vector<16x16xf32>
    %65 = math.exp %64 : vector<16x16xf32>
    %66 = arith.mulf %65, %0 : vector<16x16xf32>
    %67 = vector.shape_cast %66 : vector<16x16xf32> to vector<1x16x16xf32>
    %cst_22 = arith.constant dense<0.000000e+00> : vector<1xf32>
    %68 = vector.multi_reduction <add>, %67, %cst_22 [1, 2] : vector<1x16x16xf32> to vector<1xf32>
    %69 = vector.shape_cast %68 : vector<1xf32> to vector<1x1x1xf32>
    %70 = vector.extract %69[0, 0, 0] : f32 from vector<1x1x1xf32>
    %71 = vector.broadcast %70 : f32 to vector<1x1xf32>
    %cst_23 = arith.constant dense<0.000000e+00> : vector<16x128xf32>
    %72 = tpu.matmul %66, %63, %cst_23 {dimension_numbers = #tpu.dot_dimension_numbers<[1], [0], [0], [1], [0, 0, 1, 1], [], []>} : vector<16x16xf32>, vector<16x128xf32>, vector<16x128xf32> -> vector<16x128xf32>
    %cst_24 = arith.constant 2.500000e-01 : f32
    %73 = vector.broadcast %cst_24 : f32 to vector<1x1xf32>
    %74 = arith.divf %73, %71 : vector<1x1xf32>
    %75 = vector.broadcast %74 : vector<1x1xf32> to vector<16x128xf32>
    %76 = arith.mulf %72, %75 : vector<16x128xf32>
    %77 = arith.addf %60, %76 : vector<16x128xf32>
    %cst_25 = arith.constant dense<0.000000e+00> : vector<16x128xf32>
    %78 = tpu.matmul %0, %77, %cst_25 {dimension_numbers = #tpu.dot_dimension_numbers<[1], [0], [0], [1], [0, 0, 1, 1], [], []>} : vector<16x16xf32>, vector<16x128xf32>, vector<16x128xf32> -> vector<16x128xf32>
    %c0_26 = arith.constant 0 : index
    %c0_27 = arith.constant 0 : index
    %79 = vector.load %arg4[%c0_26, %c0_27] : memref<128x128xf32, #tpu.memory_space<vmem>>, vector<128x128xf32>
    %c0_28 = arith.constant 0 : index
    %c0_29 = arith.constant 0 : index
    %80 = vector.load %arg5[%c0_28, %c0_29] : memref<128x128xf32, #tpu.memory_space<vmem>>, vector<128x128xf32>
    %cst_30 = arith.constant dense<0.000000e+00> : vector<16x128xf32>
    %81 = tpu.matmul %78, %79, %cst_30 {dimension_numbers = #tpu.dot_dimension_numbers<[1], [1], [0], [0], [0, 0, 1, 0], [], []>} : vector<16x128xf32>, vector<128x128xf32>, vector<16x128xf32> -> vector<16x128xf32>
    %82 = math.tanh %81 : vector<16x128xf32>
    %cst_31 = arith.constant dense<0.000000e+00> : vector<16x128xf32>
    %83 = tpu.matmul %78, %80, %cst_31 {dimension_numbers = #tpu.dot_dimension_numbers<[1], [1], [0], [0], [0, 0, 1, 0], [], []>} : vector<16x128xf32>, vector<128x128xf32>, vector<16x128xf32> -> vector<16x128xf32>
    %84 = math.tanh %83 : vector<16x128xf32>
    %cst_32 = arith.constant 0.176776692 : f32
    %85 = vector.broadcast %cst_32 : f32 to vector<16x128xf32>
    %86 = arith.mulf %84, %85 : vector<16x128xf32>
    %87 = math.tanh %82 : vector<16x128xf32>
    %cst_33 = arith.constant dense<0.000000e+00> : vector<16x16xf32>
    %88 = tpu.matmul %86, %82, %cst_33 {dimension_numbers = #tpu.dot_dimension_numbers<[1], [1], [0], [0], [0, 0, 1, 0], [], []>} : vector<16x128xf32>, vector<16x128xf32>, vector<16x16xf32> -> vector<16x16xf32>
    %89 = math.exp %88 : vector<16x16xf32>
    %90 = arith.mulf %89, %0 : vector<16x16xf32>
    %91 = vector.shape_cast %90 : vector<16x16xf32> to vector<1x16x16xf32>
    %cst_34 = arith.constant dense<0.000000e+00> : vector<1xf32>
    %92 = vector.multi_reduction <add>, %91, %cst_34 [1, 2] : vector<1x16x16xf32> to vector<1xf32>
    %93 = vector.shape_cast %92 : vector<1xf32> to vector<1x1x1xf32>
    %94 = vector.extract %93[0, 0, 0] : f32 from vector<1x1x1xf32>
    %95 = vector.broadcast %94 : f32 to vector<1x1xf32>
    %cst_35 = arith.constant dense<0.000000e+00> : vector<16x128xf32>
    %96 = tpu.matmul %90, %87, %cst_35 {dimension_numbers = #tpu.dot_dimension_numbers<[1], [0], [0], [1], [0, 0, 1, 1], [], []>} : vector<16x16xf32>, vector<16x128xf32>, vector<16x128xf32> -> vector<16x128xf32>
    %cst_36 = arith.constant 1.000000e+00 : f32
    %97 = vector.broadcast %cst_36 : f32 to vector<1x1xf32>
    %98 = arith.divf %97, %95 : vector<1x1xf32>
    %99 = vector.broadcast %98 : vector<1x1xf32> to vector<16x128xf32>
    %100 = arith.mulf %96, %99 : vector<16x128xf32>
    %cst_37 = arith.constant dense<0.000000e+00> : vector<16x128xf32>
    %101 = tpu.matmul %0, %100, %cst_37 {dimension_numbers = #tpu.dot_dimension_numbers<[1], [0], [0], [1], [0, 0, 1, 1], [], []>} : vector<16x16xf32>, vector<16x128xf32>, vector<16x128xf32> -> vector<16x128xf32>
    %c0_38 = arith.constant 0 : index
    %c0_39 = arith.constant 0 : index
    %102 = vector.load %arg6[%c0_38, %c0_39] : memref<128x128xf32, #tpu.memory_space<vmem>>, vector<128x128xf32>
    %c0_40 = arith.constant 0 : index
    %c0_41 = arith.constant 0 : index
    %103 = vector.load %arg7[%c0_40, %c0_41] : memref<128x128xf32, #tpu.memory_space<vmem>>, vector<128x128xf32>
    %cst_42 = arith.constant dense<0.000000e+00> : vector<16x128xf32>
    %104 = tpu.matmul %101, %102, %cst_42 {dimension_numbers = #tpu.dot_dimension_numbers<[1], [1], [0], [0], [0, 0, 1, 0], [], []>} : vector<16x128xf32>, vector<128x128xf32>, vector<16x128xf32> -> vector<16x128xf32>
    %105 = math.tanh %104 : vector<16x128xf32>
    %cst_43 = arith.constant dense<0.000000e+00> : vector<16x128xf32>
    %106 = tpu.matmul %101, %103, %cst_43 {dimension_numbers = #tpu.dot_dimension_numbers<[1], [1], [0], [0], [0, 0, 1, 0], [], []>} : vector<16x128xf32>, vector<128x128xf32>, vector<16x128xf32> -> vector<16x128xf32>
    %107 = math.tanh %106 : vector<16x128xf32>
    %cst_44 = arith.constant 2.500000e-01 : f32
    %108 = vector.broadcast %cst_44 : f32 to vector<16x128xf32>
    %109 = arith.mulf %107, %108 : vector<16x128xf32>
    %110 = math.tanh %105 : vector<16x128xf32>
    %cst_45 = arith.constant dense<0.000000e+00> : vector<16x16xf32>
    %111 = tpu.matmul %109, %105, %cst_45 {dimension_numbers = #tpu.dot_dimension_numbers<[1], [1], [0], [0], [0, 0, 1, 0], [], []>} : vector<16x128xf32>, vector<16x128xf32>, vector<16x16xf32> -> vector<16x16xf32>
    %112 = math.exp %111 : vector<16x16xf32>
    %113 = arith.mulf %112, %0 : vector<16x16xf32>
    %114 = vector.shape_cast %113 : vector<16x16xf32> to vector<1x16x16xf32>
    %cst_46 = arith.constant dense<0.000000e+00> : vector<1xf32>
    %115 = vector.multi_reduction <add>, %114, %cst_46 [1, 2] : vector<1x16x16xf32> to vector<1xf32>
    %116 = vector.shape_cast %115 : vector<1xf32> to vector<1x1x1xf32>
    %117 = vector.extract %116[0, 0, 0] : f32 from vector<1x1x1xf32>
    %118 = vector.broadcast %117 : f32 to vector<1x1xf32>
    %cst_47 = arith.constant dense<0.000000e+00> : vector<16x128xf32>
    %119 = tpu.matmul %113, %110, %cst_47 {dimension_numbers = #tpu.dot_dimension_numbers<[1], [0], [0], [1], [0, 0, 1, 1], [], []>} : vector<16x16xf32>, vector<16x128xf32>, vector<16x128xf32> -> vector<16x128xf32>
    %cst_48 = arith.constant 1.000000e+00 : f32
    %120 = vector.broadcast %cst_48 : f32 to vector<1x1xf32>
    %121 = arith.divf %120, %118 : vector<1x1xf32>
    %122 = vector.broadcast %121 : vector<1x1xf32> to vector<16x128xf32>
    %123 = arith.mulf %119, %122 : vector<16x128xf32>
    %cst_49 = arith.constant dense<0.000000e+00> : vector<16x128xf32>
    %124 = tpu.matmul %0, %123, %cst_49 {dimension_numbers = #tpu.dot_dimension_numbers<[1], [0], [0], [1], [0, 0, 1, 1], [], []>} : vector<16x16xf32>, vector<16x128xf32>, vector<16x128xf32> -> vector<16x128xf32>
    %c0_50 = arith.constant 0 : index
    %c0_51 = arith.constant 0 : index
    %125 = vector.load %arg8[%c0_50, %c0_51] : memref<16x128xf32, #tpu.memory_space<vmem>>, vector<16x128xf32>
    tpu.vector_store %arg8[%c0_50, %c0_51], %124 {strides = array<i32>} : memref<16x128xf32, #tpu.memory_space<vmem>>, vector<16x128xf32>,
    %cst_52 = arith.constant dense<0.000000e+00> : vector<16x16xf32>
    %126 = tpu.matmul %124, %124, %cst_52 {dimension_numbers = #tpu.dot_dimension_numbers<[1], [1], [0], [0], [0, 0, 1, 0], [], []>} : vector<16x128xf32>, vector<16x128xf32>, vector<16x16xf32> -> vector<16x16xf32>
    %127 = arith.negf %126 : vector<16x16xf32>
    %128 = math.exp %127 : vector<16x16xf32>
    %cst_53 = arith.constant 1.000000e+00 : f32
    %129 = vector.broadcast %cst_53 : f32 to vector<16x16xf32>
    %130 = arith.addf %129, %128 : vector<16x16xf32>
    %131 = arith.divf %129, %130 : vector<16x16xf32>
    %c0_54 = arith.constant 0 : index
    %c0_55 = arith.constant 0 : index
    %132 = vector.load %arg9[%c0_54, %c0_55] : memref<16x16xf32, #tpu.memory_space<vmem>>, vector<16x16xf32>
    tpu.vector_store %arg9[%c0_54, %c0_55], %131 {strides = array<i32>} : memref<16x16xf32, #tpu.memory_space<vmem>>, vector<16x16xf32>,
    return
  }
}

</mosaic_0001>

<bundles_post_ra>
// kernel: igae_decoder_forward.1
= control target key start
LH: loop header
LB: loop body
LE: loop exit
PB: predicated region body
PF: predicated region fallthrough
CT: control target
= control target key end

     0   :  { %15 = vsyncpa [#allocation3], 0  ;;  %s2228_s0 = inlined_call_operand.vmem [shape: f32[16,128], index: 0, kind: input, shape index: {}]   ;;  %s2229_s1 = inlined_call_operand.vmem [shape: f32[16,16], index: 1, kind: input, shape index: {}]   ;;  %s2230_s2 = inlined_call_operand.vmem [shape: f32[512,128], index: 2, kind: input, shape index: {}]   ;;  %s2231_s3 = inlined_call_operand.vmem [shape: f32[512,128], index: 3, kind: input, shape index: {}]   ;;  %s2232_s4 = inlined_call_operand.vmem [shape: f32[128,128], index: 4, kind: input, shape index: {}]   ;;  %s2233_s5 = inlined_call_operand.vmem [shape: f32[128,128], index: 5, kind: input, shape index: {}]   ;;  %s2234_s6 = inlined_call_operand.vmem [shape: f32[128,128], index: 6, kind: input, shape index: {}]   ;;  %s2235_s7 = inlined_call_operand.vmem [shape: f32[128,128], index: 7, kind: input, shape index: {}]   ;;  %s2236_s8 = inlined_call_operand.hbm [shape: f32[16,128], index: 8, kind: output, shape index: {0}]   ;;  %s2237_s9 = inlined_call_operand.hbm [shape: f32[16,16], index: 9, kind: output, shape index: {1}]  }
   0x1   :  { %v52_v0 = vld [vmem:[%s2230_s2 + $0x78] sm:$0xff]  ;;  %v51_v2 = vld [vmem:[%s2230_s2 + $0x70] sm:$0xff]  ;;  %v50_v8 = vld [vmem:[%s2230_s2 + $0x68] sm:$0xff] }
   0x2   :  { %v68_v1 = vld [vmem:[%s2230_s2 + $0xf8] sm:$0xff]  ;;  %165 = vmatpush.xpose.msra.mxu0 %v52_v0  ;;  %v67_v3 = vld [vmem:[%s2230_s2 + $0xf0] sm:$0xff]  ;;  %v66_v9 = vld [vmem:[%s2230_s2 + $0xe8] sm:$0xff] }
   0x3   :  { %188 = vmatpush.xpose.msra.mxu1 %v68_v1  ;;  %v84_v4 = vld [vmem:[%s2230_s2 + $0x178] sm:$0xff]  ;;  %v83_v6 = vld [vmem:[%s2230_s2 + $0x170] sm:$0xff]  ;;  %v82_v10 = vld [vmem:[%s2230_s2 + $0x168] sm:$0xff] }
   0x4   :  { %v100_v5 = vld [vmem:[%s2230_s2 + $0x1f8] sm:$0xff]  ;;  %211 = vmatpush.xpose.msra.mxu2 %v84_v4  ;;  %v99_v7 = vld [vmem:[%s2230_s2 + $0x1f0] sm:$0xff]  ;;  %v98_v11 = vld [vmem:[%s2230_s2 + $0x1e8] sm:$0xff] }
   0x5   :  { %234 = vmatpush.xpose.msra.mxu3 %v100_v5  ;;  %v49_v12 = vld [vmem:[%s2230_s2 + $0x60] sm:$0xff]  ;;  %v48_v16 = vld [vmem:[%s2230_s2 + $0x58] sm:$0xff] }
   0x6   :  { %166 = vmatpush.xpose.msra.mxu0 %v51_v2  ;;  %v65_v13 = vld [vmem:[%s2230_s2 + $0xe0] sm:$0xff]  ;;  %v64_v17 = vld [vmem:[%s2230_s2 + $0xd8] sm:$0xff] }
   0x7   :  { %189 = vmatpush.xpose.msra.mxu1 %v67_v3  ;;  %v81_v14 = vld [vmem:[%s2230_s2 + $0x160] sm:$0xff] }
   0x8   :  { %212 = vmatpush.xpose.msra.mxu2 %v83_v6  ;;  %v97_v15 = vld [vmem:[%s2230_s2 + $0x1e0] sm:$0xff] }
   0x9   :  { %235 = vmatpush.xpose.msra.mxu3 %v99_v7 }
   0xa   :  { %167 = vmatpush.xpose.msra.mxu0 %v50_v8 }
   0xb   :  { %190 = vmatpush.xpose.msra.mxu1 %v66_v9 }
   0xc   :  { %213 = vmatpush.xpose.msra.mxu2 %v82_v10 }
   0xd   :  { %236 = vmatpush.xpose.msra.mxu3 %v98_v11 }
   0xe   :  { %168 = vmatpush.xpose.msra.mxu0 %v49_v12 }
   0xf   :  { %191 = vmatpush.xpose.msra.mxu1 %v65_v13 }
  0x10   :  { %214 = vmatpush.xpose.msra.mxu2 %v81_v14 }
  0x11   :  { %237 = vmatpush.xpose.msra.mxu3 %v97_v15 }
  0x12   :  { %16 = vsyncpa [#allocation5], 0  ;;  %v80_v18 = vld [vmem:[%s2230_s2 + $0x158] sm:$0xff]  ;;  %169 = vmatpush.xpose.msra.mxu0 %v48_v16  ;;  %v47_v20 = vld [vmem:[%s2230_s2 + $0x50] sm:$0xff]  ;;  %vm410_vm0 = vcmask 130048   ;;  %s1468_s12 = smov [#allocation2]  }
  0x13   :  { %v96_v19 = vld [vmem:[%s2230_s2 + $0x1d8] sm:$0xff]  ;;  %192 = vmatpush.xpose.msra.mxu1 %v64_v17  ;;  %v63_v21 = vld [vmem:[%s2230_s2 + $0xd0] sm:$0xff]  ;;  %v46_v24 = vld [vmem:[%s2230_s2 + $0x48] sm:$0xff]  ;;  %s1232_s13 = sshll.u32 %s1468_s12, 4  ;;  %s1469_s14 = smov 128   ;;  %s1233_s13 = int_to_ptr.vmem [resolvable:$true] %s1232_s13 }
  0x14   :  { %215 = vmatpush.xpose.msra.mxu2 %v80_v18  ;;  %v79_v22 = vld [vmem:[%s2230_s2 + $0x150] sm:$0xff]  ;;  %v62_v25 = vld [vmem:[%s2230_s2 + $0xc8] sm:$0xff]  ;;  %v45_v28 = vld [vmem:[%s2230_s2 + $0x40] sm:$0xff]  ;;  %s1470_s15 = smov 8   ;;  %s1247_s19 = sshll.u32 %s2237_s9, 4  ;;  %s1248_s19 = int_to_ptr.hbm [resolvable:$true] %s1247_s19 }
  0x15   :  { %238 = vmatpush.xpose.msra.mxu3 %v96_v19  ;;  %v95_v23 = vld [vmem:[%s2230_s2 + $0x1d0] sm:$0xff]  ;;  %v78_v26 = vld [vmem:[%s2230_s2 + $0x148] sm:$0xff]  ;;  %v61_v29 = vld [vmem:[%s2230_s2 + $0xc0] sm:$0xff] }
  0x16   :  { %170 = vmatpush.xpose.msra.mxu0 %v47_v20  ;;  %v94_v27 = vld [vmem:[%s2230_s2 + $0x1c8] sm:$0xff]  ;;  %v77_v30 = vld [vmem:[%s2230_s2 + $0x140] sm:$0xff]  ;;  %v44_v32 = vld [vmem:[%s2230_s2 + $0x38] sm:$0xff] }
  0x17   :  { %193 = vmatpush.xpose.msra.mxu1 %v63_v21  ;;  %v93_v31 = vld [vmem:[%s2230_s2 + $0x1c0] sm:$0xff]  ;;  %v60_v33 = vld [vmem:[%s2230_s2 + $0xb8] sm:$0xff]  ;;  %v43_v36 = vld [vmem:[%s2230_s2 + $0x30] sm:$0xff] }
  0x18   :  { %216 = vmatpush.xpose.msra.mxu2 %v79_v22  ;;  %v76_v34 = vld [vmem:[%s2230_s2 + $0x138] sm:$0xff]  ;;  %v59_v37 = vld [vmem:[%s2230_s2 + $0xb0] sm:$0xff]  ;;  %v42_v40 = vld [vmem:[%s2230_s2 + $0x28] sm:$0xff] }
  0x19   :  { %239 = vmatpush.xpose.msra.mxu3 %v95_v23  ;;  %v92_v35 = vld [vmem:[%s2230_s2 + $0x1b8] sm:$0xff]  ;;  %v75_v38 = vld [vmem:[%s2230_s2 + $0x130] sm:$0xff]  ;;  %v58_v41 = vld [vmem:[%s2230_s2 + $0xa8] sm:$0xff] }
  0x1a   :  { %171 = vmatpush.xpose.msra.mxu0 %v46_v24  ;;  %v91_v39 = vld [vmem:[%s2230_s2 + $0x1b0] sm:$0xff]  ;;  %v74_v42 = vld [vmem:[%s2230_s2 + $0x128] sm:$0xff]  ;;  %v41_v44 = vld [vmem:[%s2230_s2 + $0x20] sm:$0xff] }
  0x1b   :  { %194 = vmatpush.xpose.msra.mxu1 %v62_v25  ;;  %v90_v43 = vld [vmem:[%s2230_s2 + $0x1a8] sm:$0xff]  ;;  %v57_v45 = vld [vmem:[%s2230_s2 + $0xa0] sm:$0xff]  ;;  %v40_v48 = vld [vmem:[%s2230_s2 + $0x18] sm:$0xff] }
  0x1c   :  { %217 = vmatpush.xpose.msra.mxu2 %v78_v26  ;;  %v73_v46 = vld [vmem:[%s2230_s2 + $0x120] sm:$0xff]  ;;  %v56_v49 = vld [vmem:[%s2230_s2 + $0x98] sm:$0xff]  ;;  %v39_v52 = vld [vmem:[%s2230_s2 + $0x10] sm:$0xff] }
  0x1d   :  { %240 = vmatpush.xpose.msra.mxu3 %v94_v27  ;;  %v89_v47 = vld [vmem:[%s2230_s2 + $0x1a0] sm:$0xff]  ;;  %v72_v50 = vld [vmem:[%s2230_s2 + $0x118] sm:$0xff]  ;;  %v55_v53 = vld [vmem:[%s2230_s2 + $0x90] sm:$0xff] }
  0x1e   :  { %172 = vmatpush.xpose.msra.mxu0 %v45_v28  ;;  %v88_v51 = vld [vmem:[%s2230_s2 + $0x198] sm:$0xff]  ;;  %v71_v54 = vld [vmem:[%s2230_s2 + $0x110] sm:$0xff]  ;;  %v38_v56 = vld [vmem:[%s2230_s2 + $0x8] sm:$0xff] }
  0x1f   :  { %195 = vmatpush.xpose.msra.mxu1 %v61_v29  ;;  %v87_v55 = vld [vmem:[%s2230_s2 + $0x190] sm:$0xff]  ;;  %v54_v57 = vld [vmem:[%s2230_s2 + $0x88] sm:$0xff]  ;;  %v37_v60 = vld [vmem:[%s2230_s2] sm:$0xff] }
  0x20   :  { %218 = vmatpush.xpose.msra.mxu2 %v77_v30  ;;  %v70_v58 = vld [vmem:[%s2230_s2 + $0x108] sm:$0xff]  ;;  %v53_v61 = vld [vmem:[%s2230_s2 + $0x80] sm:$0xff]  ;;  %v116_v62 = vld [vmem:[%s2231_s3 + $0x78] sm:$0xff] }
  0x21   :  { %241 = vmatpush.xpose.msra.mxu3 %v93_v31  ;;  %v86_v59 = vld [vmem:[%s2230_s2 + $0x188] sm:$0xff]  ;;  %v132_v63 = vld [vmem:[%s2231_s3 + $0xf8] sm:$0xff]  ;;  %v69_v0 = vld [vmem:[%s2230_s2 + $0x100] sm:$0xff] }
  0x22   :  { %173 = vmatpush.xpose.msra.mxu0 %v44_v32  ;;  %v85_v1 = vld [vmem:[%s2230_s2 + $0x180] sm:$0xff]  ;;  %v148_v2 = vld [vmem:[%s2231_s3 + $0x178] sm:$0xff]  ;;  %v115_v5 = vld [vmem:[%s2231_s3 + $0x70] sm:$0xff] }
  0x23   :  { %196 = vmatpush.xpose.msra.mxu1 %v60_v33  ;;  %v164_v3 = vld [vmem:[%s2231_s3 + $0x1f8] sm:$0xff]  ;;  %v1729_v4 = vld [vmem:[%s2228_s0] sm:$0xff]  ;;  %v131_v6 = vld [vmem:[%s2231_s3 + $0xf0] sm:$0xff] }
  0x24   :  { %219 = vmatpush.xpose.msra.mxu2 %v76_v34  ;;  %v147_v7 = vld [vmem:[%s2231_s3 + $0x170] sm:$0xff]  ;;  %v114_v9 = vld [vmem:[%s2231_s3 + $0x68] sm:$0xff]  ;;  %v113_v14 = vld [vmem:[%s2231_s3 + $0x60] sm:$0xff] }
  0x25   :  { %242 = vmatpush.xpose.msra.mxu3 %v92_v35  ;;  %v163_v8 = vld [vmem:[%s2231_s3 + $0x1f0] sm:$0xff]  ;;  %v130_v10 = vld [vmem:[%s2231_s3 + $0xe8] sm:$0xff]  ;;  %v129_v15 = vld [vmem:[%s2231_s3 + $0xe0] sm:$0xff] }
  0x26   :  { %174 = vmatpush.xpose.msra.mxu0 %v43_v36  ;;  %v146_v11 = vld [vmem:[%s2231_s3 + $0x168] sm:$0xff]  ;;  %v145_v16 = vld [vmem:[%s2231_s3 + $0x160] sm:$0xff]  ;;  %v112_v18 = vld [vmem:[%s2231_s3 + $0x58] sm:$0xff] }
  0x27   :  { %197 = vmatpush.xpose.msra.mxu1 %v59_v37  ;;  %v162_v12 = vld [vmem:[%s2231_s3 + $0x1e8] sm:$0xff]  ;;  %v161_v17 = vld [vmem:[%s2231_s3 + $0x1e0] sm:$0xff]  ;;  %v128_v19 = vld [vmem:[%s2231_s3 + $0xd8] sm:$0xff] }
  0x28   :  { %220 = vmatpush.xpose.msra.mxu2 %v75_v38  ;;  %v1762_v13 = vld [vmem:[%s2228_s0 + $0x8] sm:$0xff]  ;;  %v144_v20 = vld [vmem:[%s2231_s3 + $0x158] sm:$0xff]  ;;  %v111_v22 = vld [vmem:[%s2231_s3 + $0x50] sm:$0xff] }
  0x29   :  { %243 = vmatpush.xpose.msra.mxu3 %v91_v39  ;;  %v160_v21 = vld [vmem:[%s2231_s3 + $0x1d8] sm:$0xff]  ;;  %v127_v23 = vld [vmem:[%s2231_s3 + $0xd0] sm:$0xff]  ;;  %v110_v26 = vld [vmem:[%s2231_s3 + $0x48] sm:$0xff] }
  0x2a   :  { %175 = vmatpush.xpose.msra.mxu0 %v42_v40  ;;  %v143_v24 = vld [vmem:[%s2231_s3 + $0x150] sm:$0xff]  ;;  %v126_v27 = vld [vmem:[%s2231_s3 + $0xc8] sm:$0xff]  ;;  %v109_v30 = vld [vmem:[%s2231_s3 + $0x40] sm:$0xff] }
  0x2b   :  { %198 = vmatpush.xpose.msra.mxu1 %v58_v41  ;;  %v159_v25 = vld [vmem:[%s2231_s3 + $0x1d0] sm:$0xff]  ;;  %v142_v28 = vld [vmem:[%s2231_s3 + $0x148] sm:$0xff]  ;;  %v125_v31 = vld [vmem:[%s2231_s3 + $0xc0] sm:$0xff] }
  0x2c   :  { %221 = vmatpush.xpose.msra.mxu2 %v74_v42  ;;  %v158_v29 = vld [vmem:[%s2231_s3 + $0x1c8] sm:$0xff]  ;;  %v141_v32 = vld [vmem:[%s2231_s3 + $0x140] sm:$0xff]  ;;  %v108_v34 = vld [vmem:[%s2231_s3 + $0x38] sm:$0xff] }
  0x2d   :  { %244 = vmatpush.xpose.msra.mxu3 %v90_v43  ;;  %v157_v33 = vld [vmem:[%s2231_s3 + $0x1c0] sm:$0xff]  ;;  %v124_v35 = vld [vmem:[%s2231_s3 + $0xb8] sm:$0xff]  ;;  %v107_v38 = vld [vmem:[%s2231_s3 + $0x30] sm:$0xff] }
  0x2e   :  { %176 = vmatpush.xpose.msra.mxu0 %v41_v44  ;;  %v140_v36 = vld [vmem:[%s2231_s3 + $0x138] sm:$0xff]  ;;  %v123_v39 = vld [vmem:[%s2231_s3 + $0xb0] sm:$0xff]  ;;  %v106_v42 = vld [vmem:[%s2231_s3 + $0x28] sm:$0xff] }
  0x2f   :  { %199 = vmatpush.xpose.msra.mxu1 %v57_v45  ;;  %v156_v37 = vld [vmem:[%s2231_s3 + $0x1b8] sm:$0xff]  ;;  %v139_v40 = vld [vmem:[%s2231_s3 + $0x130] sm:$0xff]  ;;  %v122_v43 = vld [vmem:[%s2231_s3 + $0xa8] sm:$0xff] }
  0x30   :  { %222 = vmatpush.xpose.msra.mxu2 %v73_v46  ;;  %v155_v41 = vld [vmem:[%s2231_s3 + $0x1b0] sm:$0xff]  ;;  %v138_v44 = vld [vmem:[%s2231_s3 + $0x128] sm:$0xff]  ;;  %v105_v46 = vld [vmem:[%s2231_s3 + $0x20] sm:$0xff] }
  0x31   :  { %245 = vmatpush.xpose.msra.mxu3 %v89_v47  ;;  %v154_v45 = vld [vmem:[%s2231_s3 + $0x1a8] sm:$0xff]  ;;  %v121_v47 = vld [vmem:[%s2231_s3 + $0xa0] sm:$0xff] }
  0x32   :  { %177 = vmatpush.xpose.msra.mxu0 %v40_v48  ;;  %v137_v48 = vld [vmem:[%s2231_s3 + $0x120] sm:$0xff] }
  0x33   :  { %200 = vmatpush.xpose.msra.mxu1 %v56_v49  ;;  %v153_v49 = vld [vmem:[%s2231_s3 + $0x1a0] sm:$0xff] }
  0x34   :  { %223 = vmatpush.xpose.msra.mxu2 %v72_v50  ;;  %v104_v50 = vld [vmem:[%s2231_s3 + $0x18] sm:$0xff] }
  0x35   :  { %246 = vmatpush.xpose.msra.mxu3 %v88_v51  ;;  %v120_v51 = vld [vmem:[%s2231_s3 + $0x98] sm:$0xff] }
  0x36   :  { %178 = vmatpush.xpose.msra.mxu0 %v39_v52  ;;  %v136_v52 = vld [vmem:[%s2231_s3 + $0x118] sm:$0xff] }
  0x37   :  { %201 = vmatpush.xpose.msra.mxu1 %v55_v53  ;;  %v152_v53 = vld [vmem:[%s2231_s3 + $0x198] sm:$0xff] }
  0x38   :  { %224 = vmatpush.xpose.msra.mxu2 %v71_v54  ;;  %v103_v54 = vld [vmem:[%s2231_s3 + $0x10] sm:$0xff] }
  0x39   :  { %247 = vmatpush.xpose.msra.mxu3 %v87_v55  ;;  %v119_v55 = vld [vmem:[%s2231_s3 + $0x90] sm:$0xff] }
  0x3a   :  { %179 = vmatpush.xpose.msra.mxu0 %v38_v56  ;;  %v135_v56 = vld [vmem:[%s2231_s3 + $0x110] sm:$0xff] }
  0x3b   :  { %202 = vmatpush.xpose.msra.mxu1 %v54_v57  ;;  %v151_v57 = vld [vmem:[%s2231_s3 + $0x190] sm:$0xff] }
  0x3c   :  { %225 = vmatpush.xpose.msra.mxu2 %v70_v58  ;;  %v102_v58 = vld [vmem:[%s2231_s3 + $0x8] sm:$0xff] }
  0x3d   :  { %248 = vmatpush.xpose.msra.mxu3 %v86_v59  ;;  %v118_v59 = vld [vmem:[%s2231_s3 + $0x88] sm:$0xff] }
  0x3e   :  { %180 = vmatpush.xpose.msra.mxu0 %v37_v60  ;;  %v134_v60 = vld [vmem:[%s2231_s3 + $0x108] sm:$0xff] }
  0x3f   :  { %203 = vmatpush.xpose.msra.mxu1 %v53_v61  ;;  %v150_v61 = vld [vmem:[%s2231_s3 + $0x188] sm:$0xff] }
  0x40   :  { %226 = vmatpush.xpose.msra.mxu2 %v69_v0  ;;  %v133_v0 = vld [vmem:[%s2231_s3 + $0x100] sm:$0xff] }
  0x41   :  { %249 = vmatpush.xpose.msra.mxu3 %v85_v1  ;;  %181 = vmatmul.f32.vlgmr.msra.gmra.mxu0 %v1729_v4  ;;  %v149_v1 = vld [vmem:[%s2231_s3 + $0x180] sm:$0xff] }
  0x42   :  { %265 = vmatpush.xpose.msrb.mxu0 %v116_v62  ;;  %204 = vmatmul.f32.vlgmr.msra.gmra.mxu1 %v1729_v4  ;;  %v101_v62 = vld [vmem:[%s2231_s3] sm:$0xff] }
  0x43   :  { %288 = vmatpush.xpose.msrb.mxu1 %v132_v63  ;;  %227 = vmatmul.f32.vlgmr.msra.gmra.mxu2 %v1729_v4  ;;  %v117_v63 = vld [vmem:[%s2231_s3 + $0x80] sm:$0xff] }
  0x44   :  { %311 = vmatpush.xpose.msrb.mxu2 %v148_v2  ;;  %250 = vmatmul.f32.vlgmr.msra.gmra.mxu3 %v1729_v4 }
  0x45   :  { %334 = vmatpush.xpose.msrb.mxu3 %v164_v3 }
  0x46   :  { %266 = vmatpush.xpose.msrb.mxu0 %v115_v5 }
  0x47   :  { %289 = vmatpush.xpose.msrb.mxu1 %v131_v6 }
  0x48   :  { %312 = vmatpush.xpose.msrb.mxu2 %v147_v7 }
  0x49   :  { %335 = vmatpush.xpose.msrb.mxu3 %v163_v8  ;;  %184 = vmatmul.f32.gmra.mxu0 %v1762_v13 }
  0x4a   :  { %267 = vmatpush.xpose.msrb.mxu0 %v114_v9  ;;  %207 = vmatmul.f32.gmra.mxu1 %v1762_v13 }
  0x4b   :  { %290 = vmatpush.xpose.msrb.mxu1 %v130_v10  ;;  %230 = vmatmul.f32.gmra.mxu2 %v1762_v13 }
  0x4c   :  { %313 = vmatpush.xpose.msrb.mxu2 %v146_v11  ;;  %253 = vmatmul.f32.gmra.mxu3 %v1762_v13 }
  0x4d   :  { %336 = vmatpush.xpose.msrb.mxu3 %v162_v12 }
  0x4e   :  { %268 = vmatpush.xpose.msrb.mxu0 %v113_v14 }
  0x4f   :  { %291 = vmatpush.xpose.msrb.mxu1 %v129_v15 }
  0x50   :  { %314 = vmatpush.xpose.msrb.mxu2 %v145_v16 }
  0x51   :  { %337 = vmatpush.xpose.msrb.mxu3 %v161_v17 }
  0x52   :  { %269 = vmatpush.xpose.msrb.mxu0 %v112_v18 }
  0x53   :  { %292 = vmatpush.xpose.msrb.mxu1 %v128_v19 }
  0x54   :  { %315 = vmatpush.xpose.msrb.mxu2 %v144_v20 }
  0x55   :  { %338 = vmatpush.xpose.msrb.mxu3 %v160_v21 }
  0x56   :  { %270 = vmatpush.xpose.msrb.mxu0 %v111_v22 }
  0x57   :  { %293 = vmatpush.xpose.msrb.mxu1 %v127_v23 }
  0x58   :  { %316 = vmatpush.xpose.msrb.mxu2 %v143_v24 }
  0x59   :  { %339 = vmatpush.xpose.msrb.mxu3 %v159_v25 }
  0x5a   :  { %271 = vmatpush.xpose.msrb.mxu0 %v110_v26 }
  0x5b   :  { %294 = vmatpush.xpose.msrb.mxu1 %v126_v27 }
  0x5c   :  { %317 = vmatpush.xpose.msrb.mxu2 %v142_v28 }
  0x5d   :  { %340 = vmatpush.xpose.msrb.mxu3 %v158_v29 }
  0x5e   :  { %272 = vmatpush.xpose.msrb.mxu0 %v109_v30 }
  0x5f   :  { %295 = vmatpush.xpose.msrb.mxu1 %v125_v31 }
  0x60   :  { %318 = vmatpush.xpose.msrb.mxu2 %v141_v32 }
  0x61   :  { %341 = vmatpush.xpose.msrb.mxu3 %v157_v33 }
  0x62   :  { %273 = vmatpush.xpose.msrb.mxu0 %v108_v34 }
  0x63   :  { %296 = vmatpush.xpose.msrb.mxu1 %v124_v35 }
  0x64   :  { %319 = vmatpush.xpose.msrb.mxu2 %v140_v36 }
  0x65   :  { %342 = vmatpush.xpose.msrb.mxu3 %v156_v37 }
  0x66   :  { %274 = vmatpush.xpose.msrb.mxu0 %v107_v38 }
  0x67   :  { %297 = vmatpush.xpose.msrb.mxu1 %v123_v39 }
  0x68   :  { %320 = vmatpush.xpose.msrb.mxu2 %v139_v40 }
  0x69   :  { %343 = vmatpush.xpose.msrb.mxu3 %v155_v41 }
  0x6a   :  { %275 = vmatpush.xpose.msrb.mxu0 %v106_v42 }
  0x6b   :  { %298 = vmatpush.xpose.msrb.mxu1 %v122_v43 }
  0x6c   :  { %321 = vmatpush.xpose.msrb.mxu2 %v138_v44 }
  0x6d   :  { %344 = vmatpush.xpose.msrb.mxu3 %v154_v45 }
  0x6e   :  { %276 = vmatpush.xpose.msrb.mxu0 %v105_v46 }
  0x6f   :  { %299 = vmatpush.xpose.msrb.mxu1 %v121_v47 }
  0x70   :  { %322 = vmatpush.xpose.msrb.mxu2 %v137_v48 }
  0x71   :  { %345 = vmatpush.xpose.msrb.mxu3 %v153_v49 }
  0x72   :  { %277 = vmatpush.xpose.msrb.mxu0 %v104_v50 }
  0x73   :  { %300 = vmatpush.xpose.msrb.mxu1 %v120_v51 }
  0x74   :  { %323 = vmatpush.xpose.msrb.mxu2 %v136_v52  ;;  %v1935_v52 = vld [vmem:[%s2229_s1] sm:$0xff] }
  0x75   :  { %346 = vmatpush.xpose.msrb.mxu3 %v152_v53 }
  0x76   :  { %278 = vmatpush.xpose.msrb.mxu0 %v103_v54 }
  0x77   :  { %301 = vmatpush.xpose.msrb.mxu1 %v119_v55 }
  0x78   :  { %324 = vmatpush.xpose.msrb.mxu2 %v135_v56 }
  0x79   :  { %347 = vmatpush.xpose.msrb.mxu3 %v151_v57 }
  0x7a   :  { %279 = vmatpush.xpose.msrb.mxu0 %v102_v58 }
  0x7b   :  { %302 = vmatpush.xpose.msrb.mxu1 %v118_v59 }
  0x7c   :  { %325 = vmatpush.xpose.msrb.mxu2 %v134_v60  ;;  %v1942_v60 = vld [vmem:[%s2229_s1 + $0x8] sm:$0xff] }
  0x7d   :  { %348 = vmatpush.xpose.msrb.mxu3 %v150_v61 }
  0x7e   :  { %280 = vmatpush.xpose.msrb.mxu0 %v101_v62 }
  0x7f   :  { %303 = vmatpush.xpose.msrb.mxu1 %v117_v63 }
  0x80   :  { %326 = vmatpush.xpose.msrb.mxu2 %v133_v0 }
  0x81   :  { %349 = vmatpush.xpose.msrb.mxu3 %v149_v1  ;;  %281 = vmatmul.f32.vlgmr.msrb.gmra.mxu0 %v1729_v4 }
  0x82   :  { %304 = vmatmul.f32.vlgmr.msrb.gmra.mxu1 %v1729_v4 }
  0x83   :  { %327 = vmatmul.f32.vlgmr.msrb.gmra.mxu2 %v1729_v4 }
  0x84   :  { %350 = vmatmul.f32.vlgmr.msrb.gmra.mxu3 %v1729_v4 }
  0x89   :  { %284 = vmatmul.f32.gmra.mxu0 %v1762_v13 }
  0x8a   :  { %307 = vmatmul.f32.gmra.mxu1 %v1762_v13 }
  0x8b   :  { %330 = vmatmul.f32.gmra.mxu2 %v1762_v13 }
  0x8c   :  { %353 = vmatmul.f32.gmra.mxu3 %v1762_v13 }
  0xbe   :  { %v182_v2 = vpop.f32.mrf.mxu0 }
  0xbf   :  { %v205_v3 = vpop.f32.mrf.mxu1  ;;  %1300 = vtanh.f32 %v182_v2 }
  0xc0   :  { %1302 = vtanh.f32 %v205_v3 }
  0xc5   :  { %v1301_v9 = vpop.eup %1300 }
  0xc6   :  { %v185_v5 = vpop.f32.mrf.mxu0  ;;  %v228_v7 = vpop.f32.mrf.mxu2 }
  0xc7   :  { %v208_v6 = vpop.f32.mrf.mxu1  ;;  %v251_v8 = vpop.f32.mrf.mxu3  ;;  %1304 = vtanh.f32 %v185_v5 }
  0xc8   :  { %v1303_v10 = vpop.eup %1302  ;;  %1306 = vtanh.f32 %v208_v6 }
  0xc9   :  { %1308 = vtanh.f32 %v1301_v9 }
  0xca   :  { %1310 = vtanh.f32 %v1303_v10 }
  0xcb   :  { %1312 = vtanh.f32 %v228_v7 }
  0xcc   :  { %1314 = vtanh.f32 %v251_v8 }
  0xcd   :  { %v1305_v4 = vpop.eup %1304 }
  0xce   :  { %v1307_v11 = vpop.eup %1306  ;;  %1316 = vtanh.f32 %v1305_v4  ;;  %395 = vmatpush.xpose.msra.mxu0 %v1305_v4  ;;  %v231_v12 = vpop.f32.mrf.mxu2 }
  0xcf   :  { %1318 = vtanh.f32 %v1307_v11  ;;  %484 = vmatpush.xpose.msra.mxu2 %v1307_v11  ;;  %v1309_v13 = vpop.eup %1308  ;;  %v254_v14 = vpop.f32.mrf.mxu3 }
  0xd0   :  { %v1311_v15 = vpop.eup %1310  ;;  %1320 = vtanh.f32 %v231_v12 }
  0xd1   :  { %v1313_v16 = vpop.eup %1312  ;;  %1322 = vtanh.f32 %v254_v14 }
  0xd2   :  { %396 = vmatpush.xpose.msra.mxu0 %v1301_v9  ;;  %v1315_v17 = vpop.eup %1314  ;;  %1324 = vtanh.f32 %v1313_v16 }
  0xd3   :  { %485 = vmatpush.xpose.msra.mxu2 %v1303_v10  ;;  %1326 = vtanh.f32 %v1315_v17 }
  0xd4   :  { %v1317_v18 = vpop.eup %1316 }
  0xd5   :  { %v1319_v19 = vpop.eup %1318  ;;  %444 = vmatpush.msra.mxu1 %v1317_v18 }
  0xd6   :  { %532 = vmatpush.msra.mxu3 %v1319_v19  ;;  %v1321_v20 = vpop.eup %1320 }
  0xd7   :  { %445 = vmatpush.msra.mxu1 %v1309_v13  ;;  %v1323_v21 = vpop.eup %1322  ;;  %1328 = vtanh.f32 %v1321_v20  ;;  %574 = vmatpush.xpose.msrb.mxu0 %v1321_v20 }
  0xd8   :  { %533 = vmatpush.msra.mxu3 %v1311_v15  ;;  %1330 = vtanh.f32 %v1323_v21  ;;  %664 = vmatpush.xpose.msrb.mxu2 %v1323_v21  ;;  %v1325_v22 = vpop.eup %1324 }
  0xd9   :  { %v1327_v23 = vpop.eup %1326 }
  0xdb   :  { %575 = vmatpush.xpose.msrb.mxu0 %v1313_v16 }
  0xdc   :  { %665 = vmatpush.xpose.msrb.mxu2 %v1315_v17 }
  0xdd   :  { %v1329_v24 = vpop.eup %1328 }
  0xde   :  { %v1331_v25 = vpop.eup %1330  ;;  %622 = vmatpush.msrb.mxu1 %v1329_v24 }
  0xdf   :  { %712 = vmatpush.msrb.mxu3 %v1331_v25 }
  0xe0   :  { %623 = vmatpush.msrb.mxu1 %v1325_v22 }
  0xe1   :  { %713 = vmatpush.msrb.mxu3 %v1327_v23 }
  0xfe   :  { %v282_v26 = vpop.f32.mrf.mxu0 }
  0xff   :  { %v305_v27 = vpop.f32.mrf.mxu1  ;;  %1332 = vtanh.f32 %v282_v26 }
 0x100   :  { %1334 = vtanh.f32 %v305_v27 }
 0x105   :  { %v1333_v28 = vpop.eup %1332 }
 0x106   :  { %v1335_v29 = vpop.eup %1334  ;;  %v365_v30 = vmul.f32 0.25, %v1333_v28  ;;  %v285_v31 = vpop.f32.mrf.mxu0 }
 0x107   :  { %v308_v32 = vpop.f32.mrf.mxu1  ;;  %v366_v33 = vmul.f32 0.25, %v1335_v29  ;;  %1336 = vtanh.f32 %v285_v31  ;;  %v328_v34 = vpop.f32.mrf.mxu2 }
 0x108   :  { %v351_v35 = vpop.f32.mrf.mxu3  ;;  %1338 = vtanh.f32 %v308_v32  ;;  %397 = vmatmul.f32.vlgmr.msra.gmra.mxu0 %v365_v30 }
 0x109   :  { %486 = vmatmul.f32.vlgmr.msra.gmra.mxu2 %v366_v33  ;;  %1340 = vtanh.f32 %v328_v34 }
 0x10a   :  { %1342 = vtanh.f32 %v351_v35 }
 0x10d   :  { %v1337_v36 = vpop.eup %1336 }
 0x10e   :  { %v1339_v37 = vpop.eup %1338  ;;  %v369_v38 = vmul.f32 0.25, %v1337_v36 }
 0x10f   :  { %v370_v39 = vmul.f32 0.25, %v1339_v37  ;;  %v331_v40 = vpop.f32.mrf.mxu2  ;;  %v1341_v41 = vpop.eup %1340 }
 0x110   :  { %400 = vmatmul.f32.gmra.mxu0 %v369_v38  ;;  %v354_v42 = vpop.f32.mrf.mxu3  ;;  %v1343_v43 = vpop.eup %1342  ;;  %1344 = vtanh.f32 %v331_v40  ;;  %v367_v44 = vmul.f32 0.25, %v1341_v41 }
 0x111   :  { %489 = vmatmul.f32.gmra.mxu2 %v370_v39  ;;  %1346 = vtanh.f32 %v354_v42  ;;  %v368_v45 = vmul.f32 0.25, %v1343_v43 }
 0x116   :  { %v1345_v46 = vpop.eup %1344 }
 0x117   :  { %v1347_v47 = vpop.eup %1346  ;;  %v371_v48 = vmul.f32 0.25, %v1345_v46 }
 0x118   :  { %576 = vmatmul.f32.vlgmr.msrb.gmra.mxu0 %v367_v44  ;;  %v372_v49 = vmul.f32 0.25, %v1347_v47 }
 0x119   :  { %666 = vmatmul.f32.vlgmr.msrb.gmra.mxu2 %v368_v45 }
 0x120   :  { %579 = vmatmul.f32.gmra.mxu0 %v371_v48 }
 0x121   :  { %669 = vmatmul.f32.gmra.mxu2 %v372_v49 }
 0x185   :  { %v398_v50 = vpop.f32.mrf.mxu0 }
 0x186   :  { %v404_v51 = vmul.f32 1.442695, %v398_v50 }
 0x188   :  { %1348 = vpow2.f32 %v404_v51 }
 0x18c   :  { %v487_v53 = vpop.f32.mrf.mxu2 }
 0x18d   :  { %v493_v54 = vmul.f32 1.442695, %v487_v53  ;;  %v401_v55 = vpop.f32.mrf.mxu0 }
 0x18e   :  { %v1349_v56 = vpop.eup %1348  ;;  %v406_v57 = vmul.f32 1.442695, %v401_v55 }
 0x18f   :  { %v408_v58 = vmul.f32 %v1349_v56, %v1935_v52  ;;  %1350 = vpow2.f32 %v493_v54 }
 0x190   :  { %1352 = vpow2.f32 %v406_v57 }
 0x191   :  { %1264 = vmatmul.msk.f32.vlgmr.msra.gmra.mxu1 %vm410_vm0, %v408_v58  ;;  %v411_v5 = vsel %vm410_vm0, %v408_v58, 0.0 }
 0x194   :  { %v490_v59 = vpop.f32.mrf.mxu2 }
 0x195   :  { %v1351_v61 = vpop.eup %1350  ;;  %v495_v62 = vmul.f32 1.442695, %v490_v59  ;;  %v577_v63 = vpop.f32.mrf.mxu0 }
 0x196   :  { %v1353_v0 = vpop.eup %1352  ;;  %v497_v1 = vmul.f32 %v1351_v61, %v1935_v52  ;;  %v583_v2 = vmul.f32 1.442695, %v577_v63 }
 0x197   :  { %1354 = vpow2.f32 %v495_v62  ;;  %v409_v3 = vmul.f32 %v1353_v0, %v1942_v60 }
 0x198   :  { %1356 = vpow2.f32 %v583_v2  ;;  %1266 = vmatmul.msk.f32.vlgmr.msra.gmra.mxu3 %vm410_vm0, %v497_v1  ;;  %v499_v16 = vsel %vm410_vm0, %v497_v1, 0.0 }
 0x199   :  { %1265 = vmatmul.msk.f32.gmra.mxu1 %vm410_vm0, %v409_v3  ;;  %v412_v6 = vsel %vm410_vm0, %v409_v3, 0.0 }
 0x19a   :  { %v413_v7 = vadd.f32 %v412_v6, %v411_v5 }
 0x19c   :  { %v667_v8 = vpop.f32.mrf.mxu2  ;;  %414 = vadd.xlane.f32.xlu0 %v413_v7 }
 0x19d   :  { %v1355_v9 = vpop.eup %1354  ;;  %v673_v10 = vmul.f32 1.442695, %v667_v8  ;;  %v580_v4 = vpop.f32.mrf.mxu0 }
 0x19e   :  { %v1357_v11 = vpop.eup %1356  ;;  %v585_v12 = vmul.f32 1.442695, %v580_v4  ;;  %v498_v13 = vmul.f32 %v1355_v9, %v1942_v60 }
 0x19f   :  { %v587_v14 = vmul.f32 %v1357_v11, %v1935_v52  ;;  %1358 = vpow2.f32 %v673_v10 }
 0x1a0   :  { %1360 = vpow2.f32 %v585_v12  ;;  %1267 = vmatmul.msk.f32.gmra.mxu3 %vm410_vm0, %v498_v13  ;;  %v500_v15 = vsel %vm410_vm0, %v498_v13, 0.0 }
 0x1a1   :  { %1268 = vmatmul.msk.f32.vlgmr.msrb.gmra.mxu1 %vm410_vm0, %v587_v14  ;;  %v501_v17 = vadd.f32 %v500_v15, %v499_v16  ;;  %v589_v24 = vsel %vm410_vm0, %v587_v14, 0.0 }
 0x1a4   :  { %v670_v18 = vpop.f32.mrf.mxu2  ;;  %502 = vadd.xlane.f32.xlu0 %v501_v17 }
 0x1a5   :  { %v1359_v19 = vpop.eup %1358  ;;  %v675_v20 = vmul.f32 1.442695, %v670_v18 }
 0x1a6   :  { %v1361_v21 = vpop.eup %1360  ;;  %v677_v22 = vmul.f32 %v1359_v19, %v1935_v52 }
 0x1a7   :  { %1362 = vpow2.f32 %v675_v20  ;;  %v588_v23 = vmul.f32 %v1361_v21, %v1942_v60 }
 0x1a8   :  { %1270 = vmatmul.msk.f32.vlgmr.msrb.gmra.mxu3 %vm410_vm0, %v677_v22  ;;  %v679_v30 = vsel %vm410_vm0, %v677_v22, 0.0 }
 0x1a9   :  { %1269 = vmatmul.msk.f32.gmra.mxu1 %vm410_vm0, %v588_v23  ;;  %v590_v25 = vsel %vm410_vm0, %v588_v23, 0.0  ;;  %v793_v23 = vld [vmem:[%s2233_s5 + $0x40] sm:$0xff] }
 0x1aa   :  { %v591_v26 = vadd.f32 %v590_v25, %v589_v24  ;;  %v784_v25 = vld [vmem:[%s2232_s4 + $0x78] sm:$0xff] }
 0x1ab   :  { %801 = vmatpush.xpose.msra.mxu1 %v784_v25  ;;  %v792_v25 = vld [vmem:[%s2233_s5 + $0x38] sm:$0xff] }
 0x1ac   :  { %592 = vadd.xlane.f32.xlu1 %v591_v26  ;;  %v800_v26 = vld [vmem:[%s2233_s5 + $0x78] sm:$0xff] }
 0x1ad   :  { %v1363_v27 = vpop.eup %1362  ;;  %826 = vmatpush.xpose.msra.mxu2 %v800_v26  ;;  %v775_v26 = vld [vmem:[%s2232_s4 + $0x30] sm:$0xff] }
 0x1ae   :  { %v678_v28 = vmul.f32 %v1363_v27, %v1942_v60  ;;  %v791_v27 = vld [vmem:[%s2233_s5 + $0x30] sm:$0xff] }
 0x1b0   :  { %1271 = vmatmul.msk.f32.gmra.mxu3 %vm410_vm0, %v678_v28  ;;  %v680_v29 = vsel %vm410_vm0, %v678_v28, 0.0 }
 0x1b1   :  { %v681_v31 = vadd.f32 %v680_v29, %v679_v30 }
 0x1b4   :  { %682 = vadd.xlane.f32.xlu1 %v681_v31 }
 0x20e   :  { %v1966_v0 = vpop.f32.mrf.mxu1 }
 0x20f   :  { %v415_v32 = vpop.xlane.xlu0 %414 }
 0x210   :  { %v416_v33 = vrot.slane %v415_v32, 4 }
 0x212   :  { %v417_v34 = vadd.f32 %v416_v33, %v415_v32 }
 0x214   :  { %v418_v35 = vrot.slane %v417_v34, 2 }
 0x216   :  { %v419_v36 = vadd.f32 %v418_v35, %v417_v34  ;;  %v1970_v10 = vpop.f32.mrf.mxu1  ;;  %v783_v34 = vld [vmem:[%s2232_s4 + $0x70] sm:$0xff] }
 0x217   :  { %v503_v37 = vpop.xlane.xlu0 %502  ;;  %v799_v35 = vld [vmem:[%s2233_s5 + $0x70] sm:$0xff]  ;;  %802 = vmatpush.xpose.msra.mxu1 %v783_v34 }
 0x218   :  { %v504_v38 = vrot.slane %v503_v37, 4  ;;  %v420_v39 = vrot.slane %v419_v36, 1  ;;  %827 = vmatpush.xpose.msra.mxu2 %v799_v35  ;;  %v771_v34 = vld [vmem:[%s2232_s4 + $0x10] sm:$0xff] }
 0x219   :  { %v787_v35 = vld [vmem:[%s2233_s5 + $0x10] sm:$0xff] }
 0x21a   :  { %v505_v40 = vadd.f32 %v504_v38, %v503_v37  ;;  %v421_v41 = vadd.f32 %v420_v39, %v419_v36 }
 0x21b   :  { %v1968_v2 = vpop.f32.mrf.mxu3 }
 0x21c   :  { %v506_v42 = vrot.slane %v505_v40, 2  ;;  %1284 = vpush %v421_v41 }
 0x21e   :  { %v507_v43 = vadd.f32 %v506_v42, %v505_v40  ;;  %v625_v31 = vpop.f32.mrf.mxu1 }
 0x21f   :  { %v593_v44 = vpop.xlane.xlu1 %592 }
 0x220   :  { %v594_v45 = vrot.slane %v593_v44, 4  ;;  %v508_v46 = vrot.slane %v507_v43, 1 }
 0x222   :  { %v595_v47 = vadd.f32 %v594_v45, %v593_v44  ;;  %v509_v48 = vadd.f32 %v508_v46, %v507_v43  ;;  %v782_v46 = vld [vmem:[%s2232_s4 + $0x68] sm:$0xff] }
 0x223   :  { %v1972_v13 = vpop.f32.mrf.mxu3  ;;  %803 = vmatpush.xpose.msra.mxu1 %v782_v46 }
 0x224   :  { %v596_v49 = vrot.slane %v595_v47, 2  ;;  %1286 = vpush %v509_v48 }
 0x226   :  { %v597_v50 = vadd.f32 %v596_v49, %v595_v47  ;;  %v798_v47 = vld [vmem:[%s2233_s5 + $0x68] sm:$0xff] }
 0x227   :  { %v683_v51 = vpop.xlane.xlu1 %682  ;;  %828 = vmatpush.xpose.msra.mxu2 %v798_v47 }
 0x228   :  { %v684_v53 = vrot.slane %v683_v51, 4  ;;  %v598_v54 = vrot.slane %v597_v50, 1 }
 0x22a   :  { %v685_v55 = vadd.f32 %v684_v53, %v683_v51  ;;  %v599_v56 = vadd.f32 %v598_v54, %v597_v50 }
 0x22b   :  { %v715_v44 = vpop.f32.mrf.mxu3 }
 0x22c   :  { %v686_v57 = vrot.slane %v685_v55, 2  ;;  %1288 = vpush %v599_v56  ;;  %v781_v56 = vld [vmem:[%s2232_s4 + $0x60] sm:$0xff] }
 0x22d   :  { %804 = vmatpush.xpose.msra.mxu1 %v781_v56 }
 0x22e   :  { %v687_v58 = vadd.f32 %v686_v57, %v685_v55  ;;  %v797_v57 = vld [vmem:[%s2233_s5 + $0x60] sm:$0xff] }
 0x22f   :  { %829 = vmatpush.xpose.msra.mxu2 %v797_v57 }
 0x230   :  { %v688_v59 = vrot.slane %v687_v58, 1 }
 0x232   :  { %v689_v61 = vadd.f32 %v688_v59, %v687_v58 }
 0x234   :  { %1290 = vpush %v689_v61  ;;  %v628_v61 = vpop.f32.mrf.mxu1 }
 0x24d   :  { %s1285_s1 = spop %1284 }
 0x24e   :  { %v423_v62 = vstv %s1285_s1 }
 0x24f   :  { %1364 = vrcp.f32 %v423_v62  ;;  %v464_v19 = vand.u32 2147483648, %v423_v62  ;;  %vm458_vm4 = vweird.f32 %v423_v62  ;;  %v462_v22 = vand.u32 2147483647, %v423_v62 }
 0x251   :  { %v465_v36 = vor.u32 1.1754944e-38, %v464_v19  ;;  %vm463_vm10 = vcmp.eq.f32.partialorder %v462_v22, 8.507059e+37  ;;  %v777_v22 = vld [vmem:[%s2232_s4 + $0x40] sm:$0xff] }
 0x255   :  { %s1287_s30 = spop %1286  ;;  %v1365_v1 = vpop.eup %1364 }
 0x256   :  { %v511_v63 = vstv %s1287_s30  ;;  %v454_v3 = vmul.f32 %v1365_v1, %v423_v62  ;;  %vm459_vm2 = vweird.f32 %v1365_v1 }
 0x257   :  { %1366 = vrcp.f32 %v511_v63  ;;  %v552_v18 = vand.u32 2147483648, %v511_v63  ;;  %vm546_vm3 = vweird.f32 %v511_v63  ;;  %v550_v20 = vand.u32 2147483647, %v511_v63  ;;  %vm1987_vm6 = vmor %vm458_vm4, %vm459_vm2 }
 0x258   :  { %v455_v8 = vsub.f32 1.0, %v454_v3 }
 0x259   :  { %v553_v33 = vor.u32 1.1754944e-38, %v552_v18  ;;  %vm551_vm8 = vcmp.eq.f32.partialorder %v550_v20, 8.507059e+37  ;;  %v795_v18 = vld [vmem:[%s2233_s5 + $0x50] sm:$0xff]  ;;  %v778_v20 = vld [vmem:[%s2232_s4 + $0x48] sm:$0xff] }
 0x25a   :  { %v456_v11 = vmul.f32 %v1365_v1, %v455_v8  ;;  %v780_v8 = vld [vmem:[%s2232_s4 + $0x58] sm:$0xff] }
 0x25b   :  { %805 = vmatpush.xpose.msra.mxu1 %v780_v8 }
 0x25c   :  { %v457_v17 = vadd.f32 %v1365_v1, %v456_v11 }
 0x25d   :  { %v1367_v5 = vpop.eup %1366  ;;  %s1289_s10 = spop %1288 }
 0x25e   :  { %v542_v6 = vmul.f32 %v1367_v5, %v511_v63  ;;  %v601_v7 = vstv %s1289_s10  ;;  %vm547_vm1 = vweird.f32 %v1367_v5  ;;  %v461_v32 = vsel %vm1987_vm6, %v1365_v1, %v457_v17 }
 0x25f   :  { %1368 = vrcp.f32 %v601_v7  ;;  %vm1977_vm5 = vmor %vm546_vm3, %vm547_vm1  ;;  %v642_v24 = vand.u32 2147483648, %v601_v7  ;;  %v640_v30 = vand.u32 2147483647, %v601_v7  ;;  %vm636_vm9 = vweird.f32 %v601_v7 }
 0x260   :  { %v543_v9 = vsub.f32 1.0, %v542_v6  ;;  %v466_v41 = vsel %vm463_vm10, %v465_v36, %v461_v32  ;;  %v772_v32 = vld [vmem:[%s2232_s4 + $0x18] sm:$0xff]  ;;  %v770_v36 = vld [vmem:[%s2232_s4 + $0x8] sm:$0xff] }
 0x261   :  { %v643_v40 = vor.u32 1.1754944e-38, %v642_v24  ;;  %vm641_vm12 = vcmp.eq.f32.partialorder %v640_v30, 8.507059e+37  ;;  %v467_v50 = vmul.f32 0.25, %v466_v41  ;;  %v776_v24 = vld [vmem:[%s2232_s4 + $0x38] sm:$0xff]  ;;  %v773_v30 = vld [vmem:[%s2232_s4 + $0x20] sm:$0xff] }
 0x262   :  { %v544_v4 = vmul.f32 %v1367_v5, %v543_v9  ;;  %v796_v9 = vld [vmem:[%s2233_s5 + $0x58] sm:$0xff] }
 0x263   :  { %v469_v1 = vmul.f32 %v467_v50, %v1970_v10  ;;  %v718_v10 = vpop.f32.mrf.mxu3  ;;  %830 = vmatpush.xpose.msra.mxu2 %v796_v9 }
 0x264   :  { %v545_v14 = vadd.f32 %v1367_v5, %v544_v4 }
 0x265   :  { %v1369_v12 = vpop.eup %1368  ;;  %s1291_s11 = spop %1290 }
 0x266   :  { %v632_v15 = vmul.f32 %v1369_v12, %v601_v7  ;;  %v1974_v16 = vstv %s1291_s11  ;;  %v549_v28 = vsel %vm1977_vm5, %v1367_v5, %v545_v14  ;;  %vm637_vm7 = vweird.f32 %v1369_v12  ;;  %s1234_s11 = sshll.u32 %s2236_s8, 4  ;;  %s1471_s8 = smov [#allocation4]   ;;  %s1235_s11 = int_to_ptr.hbm [resolvable:$true] %s1234_s11 }
 0x267   :  { %1370 = vrcp.f32 %v1974_v16  ;;  %v554_v39 = vsel %vm551_vm8, %v553_v33, %v549_v28  ;;  %vm638_vm11 = vmor %vm636_vm9, %vm637_vm7  ;;  %v732_v51 = vand.u32 2147483648, %v1974_v16  ;;  %v730_v55 = vand.u32 2147483647, %v1974_v16  ;;  %831 = vmatpush.xpose.msra.mxu2 %v795_v18  ;;  %v774_v28 = vld [vmem:[%s2232_s4 + $0x28] sm:$0xff]  ;;  %v788_v33 = vld [vmem:[%s2233_s5 + $0x18] sm:$0xff]  ;;  %s1245_s16 = sshll.u32 %s1471_s8, 4  ;;  %s1246_s16 = int_to_ptr.vmem [resolvable:$true] %s1245_s16 }
 0x268   :  { %v633_v21 = vsub.f32 1.0, %v632_v15  ;;  %v555_v48 = vmul.f32 0.25, %v554_v39  ;;  %vm726_vm14 = vweird.f32 %v1974_v16  ;;  %v468_v7 = vmul.f32 %v467_v50, %v1966_v0  ;;  %v779_v0 = vld [vmem:[%s2232_s4 + $0x50] sm:$0xff]  ;;  %v785_v39 = vld [vmem:[%s2233_s5] sm:$0xff] }
 0x269   :  { %v733_v62 = vor.u32 1.1754944e-38, %v732_v51  ;;  %vm731_vm1 = vcmp.eq.f32.partialorder %v730_v55, 8.507059e+37  ;;  %806 = vmatpush.xpose.msra.mxu1 %v779_v0 }
 0x26a   :  { %v634_v29 = vmul.f32 %v1369_v12, %v633_v21  ;;  %v557_v58 = vmul.f32 %v555_v48, %v1972_v13  ;;  %v556_v63 = vmul.f32 %v555_v48, %v1968_v2  ;;  %v794_v21 = vld [vmem:[%s2233_s5 + $0x48] sm:$0xff] }
 0x26b   :  { %832 = vmatpush.xpose.msra.mxu2 %v794_v21 }
 0x26c   :  { %v635_v37 = vadd.f32 %v1369_v12, %v634_v29  ;;  %v559_v2 = vadd.f32 %v557_v58, %v469_v1  ;;  %v790_v29 = vld [vmem:[%s2233_s5 + $0x28] sm:$0xff] }
 0x26d   :  { %v1371_v38 = vpop.eup %1370  ;;  %807 = vmatpush.xpose.msra.mxu1 %v778_v20 }
 0x26e   :  { %v639_v42 = vsel %vm638_vm11, %v1369_v12, %v635_v37  ;;  %v722_v43 = vmul.f32 %v1371_v38, %v1974_v16  ;;  %vm727_vm13 = vweird.f32 %v1371_v38  ;;  %v558_v12 = vadd.f32 %v556_v63, %v468_v7  ;;  %v786_v37 = vld [vmem:[%s2233_s5 + $0x8] sm:$0xff] }
 0x26f   :  { %v644_v45 = vsel %vm641_vm12, %v643_v40, %v639_v42  ;;  %vm728_vm15 = vmor %vm726_vm14, %vm727_vm13  ;;  %833 = vmatpush.xpose.msra.mxu2 %v793_v23 }
 0x270   :  { %v723_v49 = vsub.f32 1.0, %v722_v43  ;;  %v645_v53 = vmul.f32 0.25, %v644_v45 }
 0x271   :  { %808 = vmatpush.xpose.msra.mxu1 %v777_v22  ;;  %v977_v22 = vld [vmem:[%s2234_s6 + $0x58] sm:$0xff] }
 0x272   :  { %v724_v54 = vmul.f32 %v1371_v38, %v723_v49  ;;  %v647_v5 = vmul.f32 %v645_v53, %v628_v61  ;;  %v646_v11 = vmul.f32 %v645_v53, %v625_v31  ;;  %v789_v31 = vld [vmem:[%s2233_s5 + $0x20] sm:$0xff] }
 0x273   :  { %834 = vmatpush.xpose.msra.mxu2 %v792_v25 }
 0x274   :  { %v725_v59 = vadd.f32 %v1371_v38, %v724_v54  ;;  %v649_v13 = vadd.f32 %v647_v5, %v559_v2  ;;  %v648_v17 = vadd.f32 %v646_v11, %v558_v12 }
 0x275   :  { %809 = vmatpush.xpose.msra.mxu1 %v776_v24 }
 0x276   :  { %v729_v3 = vsel %vm728_vm15, %v1371_v38, %v725_v59  ;;  %v769_v38 = vld [vmem:[%s2232_s4] sm:$0xff] }
 0x277   :  { %v734_v6 = vsel %vm731_vm1, %v733_v62, %v729_v3  ;;  %835 = vmatpush.xpose.msra.mxu2 %v791_v27 }
 0x278   :  { %v735_v4 = vmul.f32 0.25, %v734_v6 }
 0x279   :  { %810 = vmatpush.xpose.msra.mxu1 %v775_v26 }
 0x27a   :  { %v737_v14 = vmul.f32 %v735_v4, %v718_v10  ;;  %v736_v15 = vmul.f32 %v735_v4, %v715_v44  ;;  %v981_v10 = vld [vmem:[%s2234_s6 + $0x78] sm:$0xff] }
 0x27b   :  { %836 = vmatpush.xpose.msra.mxu2 %v790_v29 }
 0x27c   :  { %v739_v16 = vadd.f32 %v737_v14, %v649_v13  ;;  %v738_v19 = vadd.f32 %v736_v15, %v648_v17  ;;  %v980_v13 = vld [vmem:[%s2234_s6 + $0x70] sm:$0xff]  ;;  %v979_v14 = vld [vmem:[%s2234_s6 + $0x68] sm:$0xff]  ;;  %v978_v17 = vld [vmem:[%s2234_s6 + $0x60] sm:$0xff] }
 0x27d   :  { %811 = vmatpush.xpose.msra.mxu1 %v774_v28  ;;  %v976_v28 = vld [vmem:[%s2234_s6 + $0x50] sm:$0xff] }
 0x27e   :  { %760 = vmatpush.msra.mxu0 %v739_v16 }
 0x27f   :  { %837 = vmatpush.xpose.msra.mxu2 %v789_v31  ;;  %v997_v31 = vld [vmem:[%s2235_s7 + $0x78] sm:$0xff] }
 0x280   :  { %761 = vmatpush.msra.mxu0 %v738_v19 }
 0x281   :  { %1272 = vmatmul.msk.f32.vlgmr.msra.gmra.mxu0 %vm410_vm0, %v1935_v52  ;;  %812 = vmatpush.xpose.msra.mxu1 %v773_v30 }
 0x283   :  { %838 = vmatpush.xpose.msra.mxu2 %v788_v33  ;;  %v996_v33 = vld [vmem:[%s2235_s7 + $0x70] sm:$0xff] }
 0x285   :  { %813 = vmatpush.xpose.msra.mxu1 %v772_v32  ;;  %v975_v32 = vld [vmem:[%s2234_s6 + $0x48] sm:$0xff] }
 0x287   :  { %839 = vmatpush.xpose.msra.mxu2 %v787_v35  ;;  %v995_v35 = vld [vmem:[%s2235_s7 + $0x68] sm:$0xff] }
 0x289   :  { %1273 = vmatmul.msk.f32.gmra.mxu0 %vm410_vm0, %v1942_v60  ;;  %814 = vmatpush.xpose.msra.mxu1 %v771_v34  ;;  %v974_v34 = vld [vmem:[%s2234_s6 + $0x40] sm:$0xff] }
 0x28b   :  { %840 = vmatpush.xpose.msra.mxu2 %v786_v37  ;;  %v994_v37 = vld [vmem:[%s2235_s7 + $0x60] sm:$0xff] }
 0x28d   :  { %815 = vmatpush.xpose.msra.mxu1 %v770_v36  ;;  %v973_v36 = vld [vmem:[%s2234_s6 + $0x38] sm:$0xff] }
 0x28f   :  { %841 = vmatpush.xpose.msra.mxu2 %v785_v39  ;;  %v993_v39 = vld [vmem:[%s2235_s7 + $0x58] sm:$0xff] }
 0x291   :  { %816 = vmatpush.xpose.msra.mxu1 %v769_v38  ;;  %v972_v38 = vld [vmem:[%s2234_s6 + $0x30] sm:$0xff] }
 0x2fe   :  { %v763_v40 = vpop.f32.mrf.mxu0 }
 0x2ff   :  { %817 = vmatmul.f32.vlgmr.msra.gmra.mxu1 %v763_v40  ;;  %842 = vmatmul.f32.vlgmr.msra.gmra.mxu2 %v763_v40  ;;  %v971_v40 = vld [vmem:[%s2234_s6 + $0x28] sm:$0xff] }
 0x306   :  { %v766_v41 = vpop.f32.mrf.mxu0 }
 0x307   :  { %820 = vmatmul.f32.gmra.mxu1 %v766_v41  ;;  %845 = vmatmul.f32.gmra.mxu2 %v766_v41  ;;  %v992_v41 = vld [vmem:[%s2235_s7 + $0x50] sm:$0xff] }
 0x37c   :  { %v818_v42 = vpop.f32.mrf.mxu1 }
 0x37d   :  { %1372 = vtanh.f32 %v818_v42  ;;  %v970_v42 = vld [vmem:[%s2234_s6 + $0x20] sm:$0xff] }
 0x382   :  { %v843_v43 = vpop.f32.mrf.mxu2 }
 0x383   :  { %v1373_v45 = vpop.eup %1372 }
 0x384   :  { %v821_v44 = vpop.f32.mrf.mxu1 }
 0x385   :  { %1374 = vtanh.f32 %v821_v44  ;;  %v969_v44 = vld [vmem:[%s2234_s6 + $0x18] sm:$0xff] }
 0x386   :  { %1376 = vtanh.f32 %v843_v43  ;;  %v991_v43 = vld [vmem:[%s2235_s7 + $0x48] sm:$0xff] }
 0x38a   :  { %v846_v47 = vpop.f32.mrf.mxu2 }
 0x38b   :  { %v1375_v46 = vpop.eup %1374 }
 0x38c   :  { %1378 = vtanh.f32 %v1375_v46  ;;  %869 = vmatpush.xpose.msra.mxu3 %v1375_v46  ;;  %v1377_v48 = vpop.eup %1376  ;;  %v968_v46 = vld [vmem:[%s2234_s6 + $0x10] sm:$0xff] }
 0x38d   :  { %1380 = vtanh.f32 %v1373_v45  ;;  %v851_v49 = vmul.f32 0.17677669, %v1377_v48  ;;  %v967_v48 = vld [vmem:[%s2234_s6 + $0x8] sm:$0xff] }
 0x38e   :  { %1382 = vtanh.f32 %v846_v47  ;;  %v989_v47 = vld [vmem:[%s2235_s7 + $0x38] sm:$0xff] }
 0x390   :  { %870 = vmatpush.xpose.msra.mxu3 %v1373_v45  ;;  %v990_v45 = vld [vmem:[%s2235_s7 + $0x40] sm:$0xff] }
 0x392   :  { %v1379_v50 = vpop.eup %1378 }
 0x393   :  { %871 = vmatmul.f32.vlgmr.msra.gmra.mxu3 %v851_v49  ;;  %917 = vmatpush.msrb.mxu0 %v1379_v50  ;;  %v1381_v51 = vpop.eup %1380  ;;  %v988_v49 = vld [vmem:[%s2235_s7 + $0x30] sm:$0xff]  ;;  %v966_v50 = vld [vmem:[%s2234_s6] sm:$0xff] }
 0x394   :  { %v1383_v53 = vpop.eup %1382 }
 0x395   :  { %918 = vmatpush.msrb.mxu0 %v1381_v51  ;;  %v852_v54 = vmul.f32 0.17677669, %v1383_v53  ;;  %v987_v51 = vld [vmem:[%s2235_s7 + $0x28] sm:$0xff]  ;;  %v986_v53 = vld [vmem:[%s2235_s7 + $0x20] sm:$0xff] }
 0x397   :  { %998 = vmatpush.xpose.msra.mxu0 %v981_v10 }
 0x39b   :  { %874 = vmatmul.f32.gmra.mxu3 %v852_v54  ;;  %999 = vmatpush.xpose.msra.mxu0 %v980_v13  ;;  %v985_v54 = vld [vmem:[%s2235_s7 + $0x18] sm:$0xff] }
 0x39f   :  { %1000 = vmatpush.xpose.msra.mxu0 %v979_v14 }
 0x3a3   :  { %1001 = vmatpush.xpose.msra.mxu0 %v978_v17 }
 0x3a7   :  { %1002 = vmatpush.xpose.msra.mxu0 %v977_v22 }
 0x3ab   :  { %1003 = vmatpush.xpose.msra.mxu0 %v976_v28 }
 0x3af   :  { %1004 = vmatpush.xpose.msra.mxu0 %v975_v32 }
 0x3b3   :  { %1005 = vmatpush.xpose.msra.mxu0 %v974_v34 }
 0x3b7   :  { %1006 = vmatpush.xpose.msra.mxu0 %v973_v36 }
 0x3bb   :  { %1007 = vmatpush.xpose.msra.mxu0 %v972_v38 }
 0x3bf   :  { %1008 = vmatpush.xpose.msra.mxu0 %v971_v40 }
 0x3c3   :  { %1009 = vmatpush.xpose.msra.mxu0 %v970_v42 }
 0x3c7   :  { %1010 = vmatpush.xpose.msra.mxu0 %v969_v44 }
 0x3cb   :  { %1011 = vmatpush.xpose.msra.mxu0 %v968_v46 }
 0x3cf   :  { %1012 = vmatpush.xpose.msra.mxu0 %v967_v48 }
 0x3d3   :  { %1013 = vmatpush.xpose.msra.mxu0 %v966_v50 }
 0x416   :  { %v872_v55 = vpop.f32.mrf.mxu3 }
 0x417   :  { %v878_v56 = vmul.f32 1.442695, %v872_v55  ;;  %v984_v55 = vld [vmem:[%s2235_s7 + $0x10] sm:$0xff] }
 0x419   :  { %1384 = vpow2.f32 %v878_v56  ;;  %v983_v56 = vld [vmem:[%s2235_s7 + $0x8] sm:$0xff] }
 0x41e   :  { %v875_v57 = vpop.f32.mrf.mxu3 }
 0x41f   :  { %v1385_v58 = vpop.eup %1384  ;;  %v880_v59 = vmul.f32 1.442695, %v875_v57  ;;  %v982_v57 = vld [vmem:[%s2235_s7] sm:$0xff] }
 0x420   :  { %v882_v61 = vmul.f32 %v1385_v58, %v1935_v52 }
 0x421   :  { %1386 = vpow2.f32 %v880_v59 }
 0x422   :  { %1274 = vmatmul.msk.f32.vlgmr.msrb.gmra.mxu0 %vm410_vm0, %v882_v61  ;;  %v884_v1 = vsel %vm410_vm0, %v882_v61, 0.0 }
 0x427   :  { %v1387_v62 = vpop.eup %1386 }
 0x428   :  { %v883_v63 = vmul.f32 %v1387_v62, %v1942_v60 }
 0x42a   :  { %1275 = vmatmul.msk.f32.gmra.mxu0 %vm410_vm0, %v883_v63  ;;  %v885_v3 = vsel %vm410_vm0, %v883_v63, 0.0 }
 0x42b   :  { %v886_v5 = vadd.f32 %v885_v3, %v884_v1 }
 0x42d   :  { %887 = vadd.xlane.f32.xlu2 %v886_v5 }
 0x49f   :  { %v920_v0 = vpop.f32.mrf.mxu0 }
 0x4a0   :  { %v888_v6 = vpop.xlane.xlu2 %887 }
 0x4a1   :  { %v889_v7 = vrot.slane %v888_v6, 4 }
 0x4a3   :  { %v890_v8 = vadd.f32 %v889_v7, %v888_v6 }
 0x4a5   :  { %v891_v9 = vrot.slane %v890_v8, 2 }
 0x4a7   :  { %v892_v4 = vadd.f32 %v891_v9, %v890_v8  ;;  %v923_v26 = vpop.f32.mrf.mxu0 }
 0x4a9   :  { %v893_v2 = vrot.slane %v892_v4, 1 }
 0x4ab   :  { %v894_v11 = vadd.f32 %v893_v2, %v892_v4 }
 0x4ad   :  { %1292 = vpush %v894_v11 }
 0x4de   :  { %s1293_s4 = spop %1292 }
 0x4df   :  { %v896_v12 = vstv %s1293_s4 }
 0x4e0   :  { %1388 = vrcp.f32 %v896_v12  ;;  %v937_v19 = vand.u32 2147483648, %v896_v12  ;;  %v935_v21 = vand.u32 2147483647, %v896_v12  ;;  %vm931_vm3 = vweird.f32 %v896_v12 }
 0x4e2   :  { %v938_v24 = vor.u32 1.1754944e-38, %v937_v19  ;;  %vm936_vm5 = vcmp.eq.f32.partialorder %v935_v21, 8.507059e+37 }
 0x4e6   :  { %v1389_v15 = vpop.eup %1388 }
 0x4e7   :  { %v927_v16 = vmul.f32 %v1389_v15, %v896_v12  ;;  %vm932_vm2 = vweird.f32 %v1389_v15 }
 0x4e8   :  { %vm933_vm4 = vmor %vm931_vm3, %vm932_vm2 }
 0x4e9   :  { %v928_v18 = vsub.f32 1.0, %v927_v16 }
 0x4eb   :  { %v929_v20 = vmul.f32 %v1389_v15, %v928_v18 }
 0x4ed   :  { %v930_v23 = vadd.f32 %v1389_v15, %v929_v20 }
 0x4ef   :  { %v934_v25 = vsel %vm933_vm4, %v1389_v15, %v930_v23 }
 0x4f0   :  { %v939_v27 = vsel %vm936_vm5, %v938_v24, %v934_v25 }
 0x4f1   :  { %v942_v29 = vmul.f32 %v939_v27, %v923_v26  ;;  %v941_v30 = vmul.f32 %v939_v27, %v920_v0 }
 0x4f3   :  { %957 = vmatpush.msrb.mxu3 %v942_v29 }
 0x4f5   :  { %958 = vmatpush.msrb.mxu3 %v941_v30 }
 0x4f6   :  { %1276 = vmatmul.msk.f32.vlgmr.msrb.gmra.mxu3 %vm410_vm0, %v1935_v52 }
 0x4f7   :  { %1023 = vmatpush.xpose.msra.mxu3 %v997_v31 }
 0x4fb   :  { %1024 = vmatpush.xpose.msra.mxu3 %v996_v33 }
 0x4fe   :  { %1277 = vmatmul.msk.f32.gmra.mxu3 %vm410_vm0, %v1942_v60 }
 0x4ff   :  { %1025 = vmatpush.xpose.msra.mxu3 %v995_v35 }
 0x503   :  { %1026 = vmatpush.xpose.msra.mxu3 %v994_v37 }
 0x507   :  { %1027 = vmatpush.xpose.msra.mxu3 %v993_v39 }
 0x50b   :  { %1028 = vmatpush.xpose.msra.mxu3 %v992_v41 }
 0x50f   :  { %1029 = vmatpush.xpose.msra.mxu3 %v991_v43 }
 0x513   :  { %1030 = vmatpush.xpose.msra.mxu3 %v990_v45 }
 0x517   :  { %1031 = vmatpush.xpose.msra.mxu3 %v989_v47 }
 0x51b   :  { %1032 = vmatpush.xpose.msra.mxu3 %v988_v49 }
 0x51f   :  { %1033 = vmatpush.xpose.msra.mxu3 %v987_v51 }
 0x523   :  { %1034 = vmatpush.xpose.msra.mxu3 %v986_v53 }
 0x527   :  { %1035 = vmatpush.xpose.msra.mxu3 %v985_v54 }
 0x52b   :  { %1036 = vmatpush.xpose.msra.mxu3 %v984_v55 }
 0x52f   :  { %1037 = vmatpush.xpose.msra.mxu3 %v983_v56 }
 0x533   :  { %1038 = vmatpush.xpose.msra.mxu3 %v982_v57 }
 0x579   :  { %v960_v58 = vpop.f32.mrf.mxu3 }
 0x57a   :  { %1014 = vmatmul.f32.vlgmr.msra.gmra.mxu0 %v960_v58  ;;  %1039 = vmatmul.f32.vlgmr.msra.gmra.mxu3 %v960_v58 }
 0x581   :  { %v963_v59 = vpop.f32.mrf.mxu3 }
 0x582   :  { %1017 = vmatmul.f32.gmra.mxu0 %v963_v59  ;;  %1042 = vmatmul.f32.gmra.mxu3 %v963_v59 }
 0x5f7   :  { %v1015_v61 = vpop.f32.mrf.mxu0 }
 0x5f8   :  { %1390 = vtanh.f32 %v1015_v61 }
 0x5fd   :  { %v1040_v62 = vpop.f32.mrf.mxu3 }
 0x5fe   :  { %v1391_v1 = vpop.eup %1390 }
 0x5ff   :  { %v1018_v63 = vpop.f32.mrf.mxu0 }
 0x600   :  { %1392 = vtanh.f32 %v1018_v63 }
 0x601   :  { %1394 = vtanh.f32 %v1040_v62 }
 0x605   :  { %v1043_v5 = vpop.f32.mrf.mxu3 }
 0x606   :  { %v1393_v3 = vpop.eup %1392 }
 0x607   :  { %1396 = vtanh.f32 %v1393_v3  ;;  %1066 = vmatpush.xpose.msrb.mxu1 %v1393_v3  ;;  %v1395_v6 = vpop.eup %1394 }
 0x608   :  { %1398 = vtanh.f32 %v1391_v1  ;;  %v1048_v7 = vmul.f32 0.25, %v1395_v6 }
 0x609   :  { %1400 = vtanh.f32 %v1043_v5 }
 0x60b   :  { %1067 = vmatpush.xpose.msrb.mxu1 %v1391_v1 }
 0x60d   :  { %v1397_v8 = vpop.eup %1396 }
 0x60e   :  { %1068 = vmatmul.f32.vlgmr.msrb.gmra.mxu1 %v1048_v7  ;;  %1114 = vmatpush.msrb.mxu2 %v1397_v8  ;;  %v1399_v9 = vpop.eup %1398 }
 0x60f   :  { %v1401_v4 = vpop.eup %1400 }
 0x610   :  { %1115 = vmatpush.msrb.mxu2 %v1399_v9  ;;  %v1049_v2 = vmul.f32 0.25, %v1401_v4 }
 0x616   :  { %1071 = vmatmul.f32.gmra.mxu1 %v1049_v2 }
 0x68b   :  { %v1069_v11 = vpop.f32.mrf.mxu1 }
 0x68c   :  { %v1075_v10 = vmul.f32 1.442695, %v1069_v11 }
 0x68e   :  { %1402 = vpow2.f32 %v1075_v10 }
 0x693   :  { %v1072_v12 = vpop.f32.mrf.mxu1 }
 0x694   :  { %v1403_v13 = vpop.eup %1402  ;;  %v1077_v14 = vmul.f32 1.442695, %v1072_v12 }
 0x695   :  { %v1079_v15 = vmul.f32 %v1403_v13, %v1935_v52 }
 0x696   :  { %1404 = vpow2.f32 %v1077_v14 }
 0x697   :  { %1278 = vmatmul.msk.f32.vlgmr.msrb.gmra.mxu2 %vm410_vm0, %v1079_v15  ;;  %v1081_v17 = vsel %vm410_vm0, %v1079_v15, 0.0 }
 0x69c   :  { %v1405_v0 = vpop.eup %1404 }
 0x69d   :  { %v1080_v16 = vmul.f32 %v1405_v0, %v1942_v60 }
 0x69f   :  { %1279 = vmatmul.msk.f32.gmra.mxu2 %vm410_vm0, %v1080_v16  ;;  %v1082_v18 = vsel %vm410_vm0, %v1080_v16, 0.0 }
 0x6a0   :  { %v1083_v19 = vadd.f32 %v1082_v18, %v1081_v17 }
 0x6a2   :  { %1084 = vadd.xlane.f32.xlu2 %v1083_v19 }
 0x715   :  { %v1085_v20 = vpop.xlane.xlu2 %1084 }
 0x716   :  { %v1086_v21 = vrot.slane %v1085_v20, 4 }
 0x718   :  { %v1087_v22 = vadd.f32 %v1086_v21, %v1085_v20 }
 0x71a   :  { %v1088_v23 = vrot.slane %v1087_v22, 2  ;;  %v1117_v29 = vpop.f32.mrf.mxu2 }
 0x71c   :  { %v1089_v24 = vadd.f32 %v1088_v23, %v1087_v22 }
 0x71e   :  { %v1090_v25 = vrot.slane %v1089_v24, 1 }
 0x720   :  { %v1091_v26 = vadd.f32 %v1090_v25, %v1089_v24 }
 0x722   :  { %1294 = vpush %v1091_v26  ;;  %v1120_v38 = vpop.f32.mrf.mxu2 }
 0x753   :  { %s1295_s7 = spop %1294 }
 0x754   :  { %v1093_v27 = vstv %s1295_s7 }
 0x755   :  { %1406 = vrcp.f32 %v1093_v27  ;;  %v1134_v32 = vand.u32 2147483648, %v1093_v27  ;;  %v1132_v34 = vand.u32 2147483647, %v1093_v27  ;;  %vm1128_vm7 = vweird.f32 %v1093_v27 }
 0x757   :  { %v1135_v36 = vor.u32 1.1754944e-38, %v1134_v32  ;;  %vm1133_vm9 = vcmp.eq.f32.partialorder %v1132_v34, 8.507059e+37 }
 0x75b   :  { %v1407_v28 = vpop.eup %1406 }
 0x75c   :  { %v1124_v30 = vmul.f32 %v1407_v28, %v1093_v27  ;;  %vm1129_vm6 = vweird.f32 %v1407_v28 }
 0x75d   :  { %vm1130_vm8 = vmor %vm1128_vm7, %vm1129_vm6 }
 0x75e   :  { %v1125_v31 = vsub.f32 1.0, %v1124_v30 }
 0x760   :  { %v1126_v33 = vmul.f32 %v1407_v28, %v1125_v31 }
 0x762   :  { %v1127_v35 = vadd.f32 %v1407_v28, %v1126_v33 }
 0x764   :  { %v1131_v37 = vsel %vm1130_vm8, %v1407_v28, %v1127_v35 }
 0x765   :  { %v1136_v39 = vsel %vm1133_vm9, %v1135_v36, %v1131_v37 }
 0x766   :  { %v1139_v40 = vmul.f32 %v1136_v39, %v1120_v38  ;;  %v1138_v41 = vmul.f32 %v1136_v39, %v1117_v29 }
 0x768   :  { %1154 = vmatpush.msra.mxu1 %v1139_v40 }
 0x76a   :  { %1155 = vmatpush.msra.mxu1 %v1138_v41 }
 0x76b   :  { %1280 = vmatmul.msk.f32.vlgmr.msra.gmra.mxu1 %vm410_vm0, %v1935_v52 }
 0x773   :  { %1281 = vmatmul.msk.f32.gmra.mxu1 %vm410_vm0, %v1942_v60 }
 0x7e8   :  { %v1157_v42 = vpop.f32.mrf.mxu1 }
 0x7e9   :  { %1163 = vst [vmem:[#allocation2] sm:$0xff] %v1157_v42 }
 0x7f0   :  { %v1160_v43 = vpop.f32.mrf.mxu1 }
 0x7f1   :  { %1164 = vst [vmem:[#allocation2 + $0x8] sm:$0xff] %v1160_v43  ;;  %1179 = vmatpush.xpose.msra.mxu2 %v1160_v43 }
 0x7f2   :  { %1240 = dma.vmem_to_hbm [thread:$0]  %s1233_s13, 256, %s1235_s11, [#allocation3], %s1469_s14, %s1469_s14, %s1470_s15  }
 0x7f5   :  { %1180 = vmatpush.xpose.msra.mxu2 %v1157_v42 }
 0x7f8   :  { %1181 = vmatmul.f32.vlgmr.msra.gmra.mxu2 %v1157_v42 }
 0x800   :  { %1184 = vmatmul.f32.gmra.mxu2 %v1160_v43 }
 0x87b   :  { %v1182_v52 = vpop.f32.mrf.mxu2 }
 0x87c   :  { %v1282_v60 = vmul.f32 -1.442695, %v1182_v52 }
 0x87e   :  { %1408 = vpow2.f32 %v1282_v60 }
 0x883   :  { %v1185_v44 = vpop.f32.mrf.mxu2 }
 0x884   :  { %v1409_v45 = vpop.eup %1408  ;;  %v1283_v46 = vmul.f32 -1.442695, %v1185_v44 }
 0x885   :  { %v1194_v47 = vadd.f32 1.0, %v1409_v45 }
 0x886   :  { %1410 = vpow2.f32 %v1283_v46 }
 0x887   :  { %1412 = vrcp.f32 %v1194_v47  ;;  %v1207_v54 = vand.u32 2147483648, %v1194_v47  ;;  %v1205_v56 = vand.u32 2147483647, %v1194_v47  ;;  %vm1201_vm11 = vweird.f32 %v1194_v47 }
 0x889   :  { %v1208_v59 = vor.u32 1.1754944e-38, %v1207_v54  ;;  %vm1206_vm13 = vcmp.eq.f32.partialorder %v1205_v56, 8.507059e+37 }
 0x88c   :  { %v1411_v48 = vpop.eup %1410 }
 0x88d   :  { %v1413_v49 = vpop.eup %1412  ;;  %v1195_v50 = vadd.f32 1.0, %v1411_v48 }
 0x88e   :  { %v1197_v51 = vmul.f32 %v1413_v49, %v1194_v47  ;;  %vm1202_vm10 = vweird.f32 %v1413_v49 }
 0x88f   :  { %1414 = vrcp.f32 %v1195_v50  ;;  %vm1203_vm12 = vmor %vm1201_vm11, %vm1202_vm10  ;;  %v1222_v3 = vand.u32 2147483648, %v1195_v50  ;;  %v1220_v6 = vand.u32 2147483647, %v1195_v50  ;;  %vm1216_vm15 = vweird.f32 %v1195_v50 }
 0x890   :  { %v1198_v53 = vsub.f32 1.0, %v1197_v51 }
 0x891   :  { %v1223_v8 = vor.u32 1.1754944e-38, %v1222_v3  ;;  %vm1221_vm2 = vcmp.eq.f32.partialorder %v1220_v6, 8.507059e+37 }
 0x892   :  { %v1199_v55 = vmul.f32 %v1413_v49, %v1198_v53 }
 0x894   :  { %v1200_v57 = vadd.f32 %v1413_v49, %v1199_v55 }
 0x895   :  { %v1415_v58 = vpop.eup %1414 }
 0x896   :  { %v1212_v61 = vmul.f32 %v1415_v58, %v1195_v50  ;;  %v1204_v62 = vsel %vm1203_vm12, %v1413_v49, %v1200_v57  ;;  %vm1217_vm14 = vweird.f32 %v1415_v58 }
 0x897   :  { %v1209_v63 = vsel %vm1206_vm13, %v1208_v59, %v1204_v62  ;;  %vm1218_vm1 = vmor %vm1216_vm15, %vm1217_vm14 }
 0x898   :  { %v1213_v1 = vsub.f32 1.0, %v1212_v61  ;;  %1226 = vst.msk [vmem:[#allocation4] sm:$0xff] %vm410_vm0, %v1209_v63 }
 0x89a   :  { %v1214_v5 = vmul.f32 %v1415_v58, %v1213_v1 }
 0x89c   :  { %v1215_v7 = vadd.f32 %v1415_v58, %v1214_v5 }
 0x89e   :  { %v1219_v9 = vsel %vm1218_vm1, %v1415_v58, %v1215_v7 }
 0x89f   :  { %v1224_v4 = vsel %vm1221_vm2, %v1223_v8, %v1219_v9 }
 0x8a0   :  { %1227 = vst.msk [vmem:[#allocation4 + $0x8] sm:$0xff] %vm410_vm0, %v1224_v4 }
 0x8a1   :  { %1253 = dma.vmem_to_hbm [thread:$0]  %s1246_s16, 256, %s1248_s19, [#allocation5], %s1469_s14, %s1469_s14, %s1470_s15  }
 0x8a2   :  { %1464 = dma.done.wait [#allocation3], 256  }
 0x8a3   :  { %1465 = vsyncadd [#allocation3], 4294967040 }
 0x8a4   :  { %1466 = dma.done.wait [#allocation5], 256  }
 0x8a5   :  { %1467 = vsyncadd [#allocation5], 4294967040 }
 0x8a6   :  { %1262 = vsyncpa [#allocation3], 1 }
 0x8a7   :  { %1263 = vsyncpa [#allocation5], 1 }

</bundles_post_ra>
